<compile_context>
chip_gen: v5e
topology: v5e:2x2
jax: 0.10.0
libtpu: 0.0.40
codegen_flags: <defaults>
</compile_context>

<pallas_src>
import jax
import jax.numpy as jnp
from jax import lax
from jax.experimental import pallas as pl
from jax.experimental.pallas import tpu as pltpu

# ---------------- model config (small, deterministic) ----------------
VOCAB_SIZE = 96
EMBEDDING_DIM = 64
HIDDEN_SIZE = 32
NUM_LAYERS = 3
BATCH = 2
SEQ = 8

_VMEM_SPEC = pl.BlockSpec(memory_space=pltpu.MemorySpace.VMEM)


def _round_up(x, m):
    return (x + m - 1) // m * m


def _slab_layout(E, H, L):
    """Row offsets (all 8-aligned) for the single packed 128-lane weight slab."""
    offs = {}
    r = 0
    offs["w_ih_0"] = (r, r + E); r += E                        # (E, 4H)
    offs["w_hh_0"] = (r, r + H); r += H                        # (H, 4H)
    for l in range(1, L):
        offs[f"w_cat_{l}"] = (r, r + 2 * H); r += 2 * H        # [W_ih; W_hh] (2H, 4H)
    for l in range(L):
        offs[f"b_{l}"] = (r, r + 1); r = _round_up(r + 1, 8)   # (1, 4H)
    offs["w_fc"] = (r, r + H); r += H                          # (H, V_pad)
    offs["b_fc"] = (r, r + 1); r = _round_up(r + 1, 8)         # (1, V_pad)
    return offs, r


# ---------------- fused Pallas kernel ----------------
def make_fused_kernel(T, B, E, H, V_pad, L, offs):
    """Fused embedding + L-layer LSTM (wavefront) + FC kernel, no grid."""
    G = 4 * H

    def kernel(tok_ref, emb_ref, w_ref, logits_ref, hn_ref, cn_ref):
        f32 = jnp.float32

        # ---- hoisted weight loads from the packed slab (once) --------------
        def rows(name, width):
            lo, hi = offs[name]
            return w_ref[lo:hi, 0:width]

        w_ih0 = rows("w_ih_0", G)                               # (E, 4H)
        w_hh0 = rows("w_hh_0", G)                               # (H, 4H)
        w_cat = {l: rows(f"w_cat_{l}", G) for l in range(1, L)}  # (2H, 4H)
        b0 = rows("b_0", G)                                     # (1, 4H)
        b_bc = {l: jnp.broadcast_to(rows(f"b_{l}", G), (B, G))  # hoisted bcast
                for l in range(1, L)}
        w_fc = rows("w_fc", V_pad)                              # (H, V_pad)
        b_fc = rows("b_fc", V_pad)                              # (1, V_pad)

        # ---- embedding: lane-dense exact one-hot gather on the MXU ---------
        toks = tok_ref[...]                                     # (T*B, 1) int32
        col = lax.broadcasted_iota(jnp.int32, (T * B, V_pad), 1)
        onehot = (toks == col).astype(f32)                      # (T*B, V_pad)
        x_emb = jnp.dot(onehot, emb_ref[...],
                        precision=lax.Precision.HIGHEST,        # exact gather
                        preferred_element_type=f32)             # (T*B, E) time-major

        # ---- layer-0 input projection hoisted over the whole sequence ------
        gx0 = jnp.dot(x_emb, w_ih0, preferred_element_type=f32) + b0   # (T*B, 4H)

        # ---- wavefront over (layer, time): T + L - 1 dependent steps -------
        # TODO(synk): on v7x keep W_hh/W_cat MXU-resident across steps via
        # pltpu.matmul_push_rhs; generic jnp.dot kept for portability/parity.
        h = [jnp.zeros((B, H), f32) for _ in range(L)]
        c = [jnp.zeros((B, H), f32) for _ in range(L)]
        latest = [None] * L          # latest[l] = layer l's newest hidden output
        outs = []                    # last layer's h per time step (time order)

        for s in range(T + L - 1):
            active = [l for l in range(L) if 0 <= s - l < T]
            gates = []
            for l in active:
                t = s - l
                if l == 0:
                    g = gx0[t * B:(t + 1) * B, :] + jnp.dot(
                        h[0], w_hh0, preferred_element_type=f32)
                else:
                    # fused input+recurrent projection: one MXU push per layer
                    lhs = jnp.concatenate([latest[l - 1], h[l]], axis=1)  # (B, 2H)
                    g = jnp.dot(lhs, w_cat[l],
                                preferred_element_type=f32) + b_bc[l]
                gates.append(g)

            gall = gates[0] if len(gates) == 1 else jnp.concatenate(gates, axis=0)
            call = (c[active[0]] if len(active) == 1
                    else jnp.concatenate([c[l] for l in active], axis=0))
            sig = jax.nn.sigmoid(gall)            # one EUP pass for all layers
            th = jnp.tanh(gall)                   # one EUP pass for all layers
            i_g = sig[:, 0:H]
            f_g = sig[:, H:2 * H]
            g_g = th[:, 2 * H:3 * H]
            o_g = sig[:, 3 * H:4 * H]
            call = f_g * call + i_g * g_g
            hall = o_g * jnp.tanh(call)           # one EUP pass for all layers

            new_latest = list(latest)
            for idx, l in enumerate(active):
                hb = hall[idx * B:(idx + 1) * B, :]
                h[l] = hb
                c[l] = call[idx * B:(idx + 1) * B, :]
                new_latest[l] = hb
                if l == L - 1:
                    outs.append(hb)
            latest = new_latest

        # ---- FC head: single lane-dense (T*B, V_pad) output store ----------
        out_slab = jnp.concatenate(outs, axis=0)                # (T*B, H) time-major
        logits_ref[...] = jnp.dot(out_slab, w_fc,
                                  preferred_element_type=f32) + b_fc

        # ---- final states (two small stores, off the hot loop) -------------
        hn_ref[...] = jnp.concatenate(h, axis=0)                # (L*B, H)
        cn_ref[...] = jnp.concatenate(c, axis=0)

    return kernel


# ---------------- wrapper ----------------
@jax.jit
def char_lstm_forward(params, x_tokens):
    """Full forward. x_tokens: (B, T) int32. Returns (logits, (h_n, c_n))."""
    B, T = x_tokens.shape
    H, E, V, L = HIDDEN_SIZE, EMBEDDING_DIM, VOCAB_SIZE, NUM_LAYERS
    G = 4 * H
    V_pad = _round_up(V, 128)
    slab_w = max(G, V_pad)

    # time-major flattened tokens (row t*B + b) for the in-kernel gather
    tok_tm = jnp.transpose(x_tokens, (1, 0)).reshape(T * B, 1).astype(jnp.int32)

    # lane-dense embedding table: pad vocab 96 -> 128 rows (zeros never selected)
    emb_pad = jnp.pad(params["embedding"], ((0, V_pad - V), (0, 0)))

    # ---- pack every weight/bias into ONE 128-lane slab (3 input DMAs total) ----
    offs, n_rows = _slab_layout(E, H, L)
    slab = jnp.zeros((n_rows, slab_w), jnp.float32)

    def put(s, name, arr):
        lo, hi = offs[name]
        return s.at[lo:hi, :arr.shape[1]].set(arr)

    slab = put(slab, "w_ih_0", params["w_ih_0"])
    slab = put(slab, "w_hh_0", params["w_hh_0"])
    for l in range(1, L):
        slab = put(slab, f"w_cat_{l}",
                   jnp.concatenate([params[f"w_ih_{l}"], params[f"w_hh_{l}"]],
                                   axis=0))
    for l in range(L):
        slab = put(slab, f"b_{l}", params[f"b_{l}"])
    slab = put(slab, "w_fc", jnp.pad(params["w_fc_t"], ((0, 0), (0, V_pad - V))))
    slab = put(slab, "b_fc", jnp.pad(params["b_fc"], ((0, 0), (0, V_pad - V))))

    out_shapes = (
        jax.ShapeDtypeStruct((T * B, V_pad), jnp.float32),   # time-major logits
        jax.ShapeDtypeStruct((L * B, H), jnp.float32),       # h_n (flat)
        jax.ShapeDtypeStruct((L * B, H), jnp.float32),       # c_n (flat)
    )
    logits_tm, hn_flat, cn_flat = pl.pallas_call(
        make_fused_kernel(T, B, E, H, V_pad, L, offs),
        out_shape=out_shapes,
        in_specs=[_VMEM_SPEC] * 3,
        out_specs=(_VMEM_SPEC,) * 3,
    )(tok_tm, emb_pad, slab)

    # (t*B + b) -> (b*T + t) row reorder + vocab un-pad, free on the XLA side
    logits = (logits_tm.reshape(T, B, V_pad).transpose(1, 0, 2)
              .reshape(B * T, V_pad)[:, :V])
    h_n = hn_flat.reshape(L, B, H)
    c_n = cn_flat.reshape(L, B, H)
    return logits, (h_n, c_n)


# ---------------- pure-JAX reference (for correctness check) ----------------
def _lstm_layer_ref(x_tbd, w_ih_t, w_hh_t, b, h0, c0):
    H = h0.shape[-1]

    def step(carry, x_t):
        h, c = carry
        gates = x_t @ w_ih_t + h @ w_hh_t + b
        i_g = jax.nn.sigmoid(gates[:, 0:H])
        f_g = jax.nn.sigmoid(gates[:, H:2 * H])
        g_g = jnp.tanh(gates[:, 2 * H:3 * H])
        o_g = jax.nn.sigmoid(gates[:, 3 * H:4 * H])
        c = f_g * c + i_g * g_g
        h = o_g * jnp.tanh(c)
        return (h, c), h

    (h_n, c_n), out = lax.scan(step, (h0, c0), x_tbd)
    return out, h_n, c_n


def char_lstm_forward_ref(params, x_tokens):
    B, T = x_tokens.shape
    H = HIDDEN_SIZE
    emb = params["embedding"][x_tokens]
    layer_in = jnp.transpose(emb, (1, 0, 2))
    h_finals, c_finals = [], []
    for l in range(NUM_LAYERS):
        h0 = jnp.zeros((B, H), jnp.float32)
        c0 = jnp.zeros((B, H), jnp.float32)
        layer_in, h_n, c_n = _lstm_layer_ref(
            layer_in, params[f"w_ih_{l}"], params[f"w_hh_{l}"],
            params[f"b_{l}"], h0, c0)
        h_finals.append(h_n)
        c_finals.append(c_n)
    out_flat = jnp.transpose(layer_in, (1, 0, 2)).reshape(B * T, H)
    logits = out_flat @ params["w_fc_t"] + params["b_fc"]
    return logits, (jnp.stack(h_finals), jnp.stack(c_finals))


# ---------------- deterministic parameter init ----------------
def init_params(key):
    params = {}
    k = 1.0 / jnp.sqrt(HIDDEN_SIZE)
    keys = jax.random.split(key, 3 + 5 * NUM_LAYERS)
    params["embedding"] = jax.random.normal(
        keys[0], (VOCAB_SIZE, EMBEDDING_DIM), jnp.float32) * 0.1
    idx = 1
    for l in range(NUM_LAYERS):
        d_in = EMBEDDING_DIM if l == 0 else HIDDEN_SIZE
        # PyTorch stores weight_ih (4H, Din); we keep it transposed (Din, 4H)
        # with gate order [i, f, g, o].
        w_ih = jax.random.uniform(keys[idx], (d_in, 4 * HIDDEN_SIZE),
                                  jnp.float32, -k, k); idx += 1
        w_hh = jax.random.uniform(keys[idx], (HIDDEN_SIZE, 4 * HIDDEN_SIZE),
                                  jnp.float32, -k, k); idx += 1
        b_ih = jax.random.uniform(keys[idx], (4 * HIDDEN_SIZE,),
                                  jnp.float32, -k, k); idx += 1
        b_hh = jax.random.uniform(keys[idx], (4 * HIDDEN_SIZE,),
                                  jnp.float32, -k, k); idx += 1
        params[f"w_ih_{l}"] = w_ih
        params[f"w_hh_{l}"] = w_hh
        params[f"b_{l}"] = (b_ih + b_hh)[None, :]       # (1, 4H)
    params["w_fc_t"] = jax.random.uniform(
        keys[idx], (HIDDEN_SIZE, VOCAB_SIZE), jnp.float32, -k, k); idx += 1
    params["b_fc"] = jax.random.uniform(
        keys[idx], (VOCAB_SIZE,), jnp.float32, -k, k)[None, :]  # (1, V)
    return params


if __name__ == "__main__":
    key = jax.random.PRNGKey(0)
    pkey, xkey = jax.random.split(key)
    params = init_params(pkey)
    x_tokens = jax.random.randint(xkey, (BATCH, SEQ), 0, VOCAB_SIZE,
                                  dtype=jnp.int32)

    logits, (h_n, c_n) = char_lstm_forward(params, x_tokens)
    jax.block_until_ready((logits, h_n, c_n))

    # sanity: shapes match PyTorch semantics
    assert logits.shape == (BATCH * SEQ, VOCAB_SIZE)
    assert h_n.shape == (NUM_LAYERS, BATCH, HIDDEN_SIZE)
    assert c_n.shape == (NUM_LAYERS, BATCH, HIDDEN_SIZE)

    # correctness vs pure-JAX reference
    ref_logits, (ref_h, ref_c) = char_lstm_forward_ref(params, x_tokens)
    assert jnp.allclose(logits, ref_logits, rtol=1e-4, atol=1e-4)
    assert jnp.allclose(h_n, ref_h, rtol=1e-4, atol=1e-4)
    assert jnp.allclose(c_n, ref_c, rtol=1e-4, atol=1e-4)

    print("KERNEL_OK")
</pallas_src>

<mosaic_0001>
module attributes {stable_mosaic.version = 11 : i64} {
  func.func @kernel(%arg0: memref<16x1xi32, #tpu.memory_space<vmem>>, %arg1: memref<128x64xf32, #tpu.memory_space<vmem>>, %arg2: memref<288x128xf32, #tpu.memory_space<vmem>>, %arg3: memref<16x128xf32, #tpu.memory_space<vmem>>, %arg4: memref<6x32xf32, #tpu.memory_space<vmem>>, %arg5: memref<6x32xf32, #tpu.memory_space<vmem>>) attributes {dimension_semantics = [], scalar_prefetch = 0 : i64, scratch_operands = 0 : i64, tpu.core_type = #tpu.core_type<tc>} {
    %c0 = arith.constant 0 : index
    %c0_0 = arith.constant 0 : index
    %0 = vector.load %arg2[%c0, %c0_0] : memref<288x128xf32, #tpu.memory_space<vmem>>, vector<64x128xf32>
    %c64 = arith.constant 64 : index
    %c0_1 = arith.constant 0 : index
    %1 = vector.load %arg2[%c64, %c0_1] : memref<288x128xf32, #tpu.memory_space<vmem>>, vector<32x128xf32>
    %c96 = arith.constant 96 : index
    %c0_2 = arith.constant 0 : index
    %2 = vector.load %arg2[%c96, %c0_2] : memref<288x128xf32, #tpu.memory_space<vmem>>, vector<64x128xf32>
    %c160 = arith.constant 160 : index
    %c0_3 = arith.constant 0 : index
    %3 = vector.load %arg2[%c160, %c0_3] : memref<288x128xf32, #tpu.memory_space<vmem>>, vector<64x128xf32>
    %c224 = arith.constant 224 : index
    %c0_4 = arith.constant 0 : index
    %4 = vector.load %arg2[%c224, %c0_4] : memref<288x128xf32, #tpu.memory_space<vmem>>, vector<1x128xf32>
    %c232 = arith.constant 232 : index
    %c0_5 = arith.constant 0 : index
    %5 = vector.load %arg2[%c232, %c0_5] : memref<288x128xf32, #tpu.memory_space<vmem>>, vector<1x128xf32>
    %6 = vector.shape_cast %5 : vector<1x128xf32> to vector<1x128xf32>
    %7 = vector.broadcast %6 : vector<1x128xf32> to vector<2x128xf32>
    %c240 = arith.constant 240 : index
    %c0_6 = arith.constant 0 : index
    %8 = vector.load %arg2[%c240, %c0_6] : memref<288x128xf32, #tpu.memory_space<vmem>>, vector<1x128xf32>
    %9 = vector.shape_cast %8 : vector<1x128xf32> to vector<1x128xf32>
    %10 = vector.broadcast %9 : vector<1x128xf32> to vector<2x128xf32>
    %c248 = arith.constant 248 : index
    %c0_7 = arith.constant 0 : index
    %11 = vector.load %arg2[%c248, %c0_7] : memref<288x128xf32, #tpu.memory_space<vmem>>, vector<32x128xf32>
    %c280 = arith.constant 280 : index
    %c0_8 = arith.constant 0 : index
    %12 = vector.load %arg2[%c280, %c0_8] : memref<288x128xf32, #tpu.memory_space<vmem>>, vector<1x128xf32>
    %c0_9 = arith.constant 0 : index
    %c0_10 = arith.constant 0 : index
    %13 = vector.load %arg0[%c0_9, %c0_10] : memref<16x1xi32, #tpu.memory_space<vmem>>, vector<16x1xi32>
    %14 = tpu.iota {dimensions = array<i32: 1>} : vector<16x128xi32>
    %15 = vector.broadcast %13 : vector<16x1xi32> to vector<16x128xi32>
    %16 = arith.cmpi eq, %15, %14 : vector<16x128xi32>
    %17 = arith.extui %16 : vector<16x128xi1> to vector<16x128xi32>
    %18 = arith.sitofp %17 : vector<16x128xi32> to vector<16x128xf32>
    %c0_11 = arith.constant 0 : index
    %c0_12 = arith.constant 0 : index
    %19 = vector.load %arg1[%c0_11, %c0_12] : memref<128x64xf32, #tpu.memory_space<vmem>>, vector<128x64xf32>
    %cst = arith.constant dense<0.000000e+00> : vector<16x64xf32>
    %20 = tpu.matmul %18, %19, %cst {dimension_numbers = #tpu.dot_dimension_numbers<[1], [0], [0], [1], [0, 0, 1, 1], [], []>, precision = #tpu.contract_precision<fp32>} : vector<16x128xf32>, vector<128x64xf32>, vector<16x64xf32> -> vector<16x64xf32>
    %cst_13 = arith.constant dense<0.000000e+00> : vector<16x128xf32>
    %21 = tpu.matmul %20, %0, %cst_13 {dimension_numbers = #tpu.dot_dimension_numbers<[1], [0], [0], [1], [0, 0, 1, 1], [], []>} : vector<16x64xf32>, vector<64x128xf32>, vector<16x128xf32> -> vector<16x128xf32>
    %22 = vector.broadcast %4 : vector<1x128xf32> to vector<16x128xf32>
    %23 = arith.addf %21, %22 : vector<16x128xf32>
    %cst_14 = arith.constant 0.000000e+00 : f32
    %24 = vector.broadcast %cst_14 : f32 to vector<2x32xf32>
    %cst_15 = arith.constant 0.000000e+00 : f32
    %25 = vector.broadcast %cst_15 : f32 to vector<2x32xf32>
    %cst_16 = arith.constant 0.000000e+00 : f32
    %26 = vector.broadcast %cst_16 : f32 to vector<2x32xf32>
    %cst_17 = arith.constant 0.000000e+00 : f32
    %27 = vector.broadcast %cst_17 : f32 to vector<2x32xf32>
    %cst_18 = arith.constant 0.000000e+00 : f32
    %28 = vector.broadcast %cst_18 : f32 to vector<2x32xf32>
    %cst_19 = arith.constant 0.000000e+00 : f32
    %29 = vector.broadcast %cst_19 : f32 to vector<2x32xf32>
    %30 = vector.extract_strided_slice %23 {offsets = [0, 0], sizes = [2, 128], strides = [1, 1]} : vector<16x128xf32> to vector<2x128xf32>
    %cst_20 = arith.constant dense<0.000000e+00> : vector<2x128xf32>
    %31 = tpu.matmul %24, %1, %cst_20 {dimension_numbers = #tpu.dot_dimension_numbers<[1], [0], [0], [1], [0, 0, 1, 1], [], []>} : vector<2x32xf32>, vector<32x128xf32>, vector<2x128xf32> -> vector<2x128xf32>
    %32 = arith.addf %30, %31 : vector<2x128xf32>
    %33 = arith.negf %32 : vector<2x128xf32>
    %34 = math.exp %33 : vector<2x128xf32>
    %cst_21 = arith.constant 1.000000e+00 : f32
    %35 = vector.broadcast %cst_21 : f32 to vector<2x128xf32>
    %36 = arith.addf %35, %34 : vector<2x128xf32>
    %37 = arith.divf %35, %36 : vector<2x128xf32>
    %38 = math.tanh %32 : vector<2x128xf32>
    %39 = vector.extract_strided_slice %37 {offsets = [0, 0], sizes = [2, 32], strides = [1, 1]} : vector<2x128xf32> to vector<2x32xf32>
    %40 = vector.extract_strided_slice %37 {offsets = [0, 32], sizes = [2, 32], strides = [1, 1]} : vector<2x128xf32> to vector<2x32xf32>
    %41 = vector.extract_strided_slice %38 {offsets = [0, 64], sizes = [2, 32], strides = [1, 1]} : vector<2x128xf32> to vector<2x32xf32>
    %42 = vector.extract_strided_slice %37 {offsets = [0, 96], sizes = [2, 32], strides = [1, 1]} : vector<2x128xf32> to vector<2x32xf32>
    %43 = arith.mulf %40, %27 : vector<2x32xf32>
    %44 = arith.mulf %39, %41 : vector<2x32xf32>
    %45 = arith.addf %43, %44 : vector<2x32xf32>
    %46 = math.tanh %45 : vector<2x32xf32>
    %47 = arith.mulf %42, %46 : vector<2x32xf32>
    %48 = vector.extract_strided_slice %23 {offsets = [2, 0], sizes = [2, 128], strides = [1, 1]} : vector<16x128xf32> to vector<2x128xf32>
    %cst_22 = arith.constant dense<0.000000e+00> : vector<2x128xf32>
    %49 = tpu.matmul %47, %1, %cst_22 {dimension_numbers = #tpu.dot_dimension_numbers<[1], [0], [0], [1], [0, 0, 1, 1], [], []>} : vector<2x32xf32>, vector<32x128xf32>, vector<2x128xf32> -> vector<2x128xf32>
    %50 = arith.addf %48, %49 : vector<2x128xf32>
    %51 = tpu.concatenate %47, %25 in 1 : vector<2x32xf32>, vector<2x32xf32> -> vector<2x64xf32>
    %cst_23 = arith.constant dense<0.000000e+00> : vector<2x128xf32>
    %52 = tpu.matmul %51, %2, %cst_23 {dimension_numbers = #tpu.dot_dimension_numbers<[1], [0], [0], [1], [0, 0, 1, 1], [], []>} : vector<2x64xf32>, vector<64x128xf32>, vector<2x128xf32> -> vector<2x128xf32>
    %53 = arith.addf %52, %7 : vector<2x128xf32>
    %54 = tpu.concatenate %50, %53 in 0 : vector<2x128xf32>, vector<2x128xf32> -> vector<4x128xf32>
    %55 = tpu.concatenate %45, %28 in 0 : vector<2x32xf32>, vector<2x32xf32> -> vector<4x32xf32>
    %56 = arith.negf %54 : vector<4x128xf32>
    %57 = math.exp %56 : vector<4x128xf32>
    %cst_24 = arith.constant 1.000000e+00 : f32
    %58 = vector.broadcast %cst_24 : f32 to vector<4x128xf32>
    %59 = arith.addf %58, %57 : vector<4x128xf32>
    %60 = arith.divf %58, %59 : vector<4x128xf32>
    %61 = math.tanh %54 : vector<4x128xf32>
    %62 = vector.extract_strided_slice %60 {offsets = [0, 0], sizes = [4, 32], strides = [1, 1]} : vector<4x128xf32> to vector<4x32xf32>
    %63 = vector.extract_strided_slice %60 {offsets = [0, 32], sizes = [4, 32], strides = [1, 1]} : vector<4x128xf32> to vector<4x32xf32>
    %64 = vector.extract_strided_slice %61 {offsets = [0, 64], sizes = [4, 32], strides = [1, 1]} : vector<4x128xf32> to vector<4x32xf32>
    %65 = vector.extract_strided_slice %60 {offsets = [0, 96], sizes = [4, 32], strides = [1, 1]} : vector<4x128xf32> to vector<4x32xf32>
    %66 = arith.mulf %63, %55 : vector<4x32xf32>
    %67 = arith.mulf %62, %64 : vector<4x32xf32>
    %68 = arith.addf %66, %67 : vector<4x32xf32>
    %69 = math.tanh %68 : vector<4x32xf32>
    %70 = arith.mulf %65, %69 : vector<4x32xf32>
    %71 = vector.extract_strided_slice %70 {offsets = [0, 0], sizes = [2, 32], strides = [1, 1]} : vector<4x32xf32> to vector<2x32xf32>
    %72 = vector.extract_strided_slice %68 {offsets = [0, 0], sizes = [2, 32], strides = [1, 1]} : vector<4x32xf32> to vector<2x32xf32>
    %73 = vector.extract_strided_slice %70 {offsets = [2, 0], sizes = [2, 32], strides = [1, 1]} : vector<4x32xf32> to vector<2x32xf32>
    %74 = vector.extract_strided_slice %68 {offsets = [2, 0], sizes = [2, 32], strides = [1, 1]} : vector<4x32xf32> to vector<2x32xf32>
    %75 = vector.extract_strided_slice %23 {offsets = [4, 0], sizes = [2, 128], strides = [1, 1]} : vector<16x128xf32> to vector<2x128xf32>
    %cst_25 = arith.constant dense<0.000000e+00> : vector<2x128xf32>
    %76 = tpu.matmul %71, %1, %cst_25 {dimension_numbers = #tpu.dot_dimension_numbers<[1], [0], [0], [1], [0, 0, 1, 1], [], []>} : vector<2x32xf32>, vector<32x128xf32>, vector<2x128xf32> -> vector<2x128xf32>
    %77 = arith.addf %75, %76 : vector<2x128xf32>
    %78 = tpu.concatenate %71, %73 in 1 : vector<2x32xf32>, vector<2x32xf32> -> vector<2x64xf32>
    %cst_26 = arith.constant dense<0.000000e+00> : vector<2x128xf32>
    %79 = tpu.matmul %78, %2, %cst_26 {dimension_numbers = #tpu.dot_dimension_numbers<[1], [0], [0], [1], [0, 0, 1, 1], [], []>} : vector<2x64xf32>, vector<64x128xf32>, vector<2x128xf32> -> vector<2x128xf32>
    %80 = arith.addf %79, %7 : vector<2x128xf32>
    %81 = tpu.concatenate %73, %26 in 1 : vector<2x32xf32>, vector<2x32xf32> -> vector<2x64xf32>
    %cst_27 = arith.constant dense<0.000000e+00> : vector<2x128xf32>
    %82 = tpu.matmul %81, %3, %cst_27 {dimension_numbers = #tpu.dot_dimension_numbers<[1], [0], [0], [1], [0, 0, 1, 1], [], []>} : vector<2x64xf32>, vector<64x128xf32>, vector<2x128xf32> -> vector<2x128xf32>
    %83 = arith.addf %82, %10 : vector<2x128xf32>
    %84 = tpu.concatenate %77, %80, %83 in 0 : vector<2x128xf32>, vector<2x128xf32>, vector<2x128xf32> -> vector<6x128xf32>
    %85 = tpu.concatenate %72, %74, %29 in 0 : vector<2x32xf32>, vector<2x32xf32>, vector<2x32xf32> -> vector<6x32xf32>
    %86 = arith.negf %84 : vector<6x128xf32>
    %87 = math.exp %86 : vector<6x128xf32>
    %cst_28 = arith.constant 1.000000e+00 : f32
    %88 = vector.broadcast %cst_28 : f32 to vector<6x128xf32>
    %89 = arith.addf %88, %87 : vector<6x128xf32>
    %90 = arith.divf %88, %89 : vector<6x128xf32>
    %91 = math.tanh %84 : vector<6x128xf32>
    %92 = vector.extract_strided_slice %90 {offsets = [0, 0], sizes = [6, 32], strides = [1, 1]} : vector<6x128xf32> to vector<6x32xf32>
    %93 = vector.extract_strided_slice %90 {offsets = [0, 32], sizes = [6, 32], strides = [1, 1]} : vector<6x128xf32> to vector<6x32xf32>
    %94 = vector.extract_strided_slice %91 {offsets = [0, 64], sizes = [6, 32], strides = [1, 1]} : vector<6x128xf32> to vector<6x32xf32>
    %95 = vector.extract_strided_slice %90 {offsets = [0, 96], sizes = [6, 32], strides = [1, 1]} : vector<6x128xf32> to vector<6x32xf32>
    %96 = arith.mulf %93, %85 : vector<6x32xf32>
    %97 = arith.mulf %92, %94 : vector<6x32xf32>
    %98 = arith.addf %96, %97 : vector<6x32xf32>
    %99 = math.tanh %98 : vector<6x32xf32>
    %100 = arith.mulf %95, %99 : vector<6x32xf32>
    %101 = vector.extract_strided_slice %100 {offsets = [0, 0], sizes = [2, 32], strides = [1, 1]} : vector<6x32xf32> to vector<2x32xf32>
    %102 = vector.extract_strided_slice %98 {offsets = [0, 0], sizes = [2, 32], strides = [1, 1]} : vector<6x32xf32> to vector<2x32xf32>
    %103 = vector.extract_strided_slice %100 {offsets = [2, 0], sizes = [2, 32], strides = [1, 1]} : vector<6x32xf32> to vector<2x32xf32>
    %104 = vector.extract_strided_slice %98 {offsets = [2, 0], sizes = [2, 32], strides = [1, 1]} : vector<6x32xf32> to vector<2x32xf32>
    %105 = vector.extract_strided_slice %100 {offsets = [4, 0], sizes = [2, 32], strides = [1, 1]} : vector<6x32xf32> to vector<2x32xf32>
    %106 = vector.extract_strided_slice %98 {offsets = [4, 0], sizes = [2, 32], strides = [1, 1]} : vector<6x32xf32> to vector<2x32xf32>
    %107 = vector.extract_strided_slice %23 {offsets = [6, 0], sizes = [2, 128], strides = [1, 1]} : vector<16x128xf32> to vector<2x128xf32>
    %cst_29 = arith.constant dense<0.000000e+00> : vector<2x128xf32>
    %108 = tpu.matmul %101, %1, %cst_29 {dimension_numbers = #tpu.dot_dimension_numbers<[1], [0], [0], [1], [0, 0, 1, 1], [], []>} : vector<2x32xf32>, vector<32x128xf32>, vector<2x128xf32> -> vector<2x128xf32>
    %109 = arith.addf %107, %108 : vector<2x128xf32>
    %110 = tpu.concatenate %101, %103 in 1 : vector<2x32xf32>, vector<2x32xf32> -> vector<2x64xf32>
    %cst_30 = arith.constant dense<0.000000e+00> : vector<2x128xf32>
    %111 = tpu.matmul %110, %2, %cst_30 {dimension_numbers = #tpu.dot_dimension_numbers<[1], [0], [0], [1], [0, 0, 1, 1], [], []>} : vector<2x64xf32>, vector<64x128xf32>, vector<2x128xf32> -> vector<2x128xf32>
    %112 = arith.addf %111, %7 : vector<2x128xf32>
    %113 = tpu.concatenate %103, %105 in 1 : vector<2x32xf32>, vector<2x32xf32> -> vector<2x64xf32>
    %cst_31 = arith.constant dense<0.000000e+00> : vector<2x128xf32>
    %114 = tpu.matmul %113, %3, %cst_31 {dimension_numbers = #tpu.dot_dimension_numbers<[1], [0], [0], [1], [0, 0, 1, 1], [], []>} : vector<2x64xf32>, vector<64x128xf32>, vector<2x128xf32> -> vector<2x128xf32>
    %115 = arith.addf %114, %10 : vector<2x128xf32>
    %116 = tpu.concatenate %109, %112, %115 in 0 : vector<2x128xf32>, vector<2x128xf32>, vector<2x128xf32> -> vector<6x128xf32>
    %117 = tpu.concatenate %102, %104, %106 in 0 : vector<2x32xf32>, vector<2x32xf32>, vector<2x32xf32> -> vector<6x32xf32>
    %118 = arith.negf %116 : vector<6x128xf32>
    %119 = math.exp %118 : vector<6x128xf32>
    %cst_32 = arith.constant 1.000000e+00 : f32
    %120 = vector.broadcast %cst_32 : f32 to vector<6x128xf32>
    %121 = arith.addf %120, %119 : vector<6x128xf32>
    %122 = arith.divf %120, %121 : vector<6x128xf32>
    %123 = math.tanh %116 : vector<6x128xf32>
    %124 = vector.extract_strided_slice %122 {offsets = [0, 0], sizes = [6, 32], strides = [1, 1]} : vector<6x128xf32> to vector<6x32xf32>
    %125 = vector.extract_strided_slice %122 {offsets = [0, 32], sizes = [6, 32], strides = [1, 1]} : vector<6x128xf32> to vector<6x32xf32>
    %126 = vector.extract_strided_slice %123 {offsets = [0, 64], sizes = [6, 32], strides = [1, 1]} : vector<6x128xf32> to vector<6x32xf32>
    %127 = vector.extract_strided_slice %122 {offsets = [0, 96], sizes = [6, 32], strides = [1, 1]} : vector<6x128xf32> to vector<6x32xf32>
    %128 = arith.mulf %125, %117 : vector<6x32xf32>
    %129 = arith.mulf %124, %126 : vector<6x32xf32>
    %130 = arith.addf %128, %129 : vector<6x32xf32>
    %131 = math.tanh %130 : vector<6x32xf32>
    %132 = arith.mulf %127, %131 : vector<6x32xf32>
    %133 = vector.extract_strided_slice %132 {offsets = [0, 0], sizes = [2, 32], strides = [1, 1]} : vector<6x32xf32> to vector<2x32xf32>
    %134 = vector.extract_strided_slice %130 {offsets = [0, 0], sizes = [2, 32], strides = [1, 1]} : vector<6x32xf32> to vector<2x32xf32>
    %135 = vector.extract_strided_slice %132 {offsets = [2, 0], sizes = [2, 32], strides = [1, 1]} : vector<6x32xf32> to vector<2x32xf32>
    %136 = vector.extract_strided_slice %130 {offsets = [2, 0], sizes = [2, 32], strides = [1, 1]} : vector<6x32xf32> to vector<2x32xf32>
    %137 = vector.extract_strided_slice %132 {offsets = [4, 0], sizes = [2, 32], strides = [1, 1]} : vector<6x32xf32> to vector<2x32xf32>
    %138 = vector.extract_strided_slice %130 {offsets = [4, 0], sizes = [2, 32], strides = [1, 1]} : vector<6x32xf32> to vector<2x32xf32>
    %139 = vector.extract_strided_slice %23 {offsets = [8, 0], sizes = [2, 128], strides = [1, 1]} : vector<16x128xf32> to vector<2x128xf32>
    %cst_33 = arith.constant dense<0.000000e+00> : vector<2x128xf32>
    %140 = tpu.matmul %133, %1, %cst_33 {dimension_numbers = #tpu.dot_dimension_numbers<[1], [0], [0], [1], [0, 0, 1, 1], [], []>} : vector<2x32xf32>, vector<32x128xf32>, vector<2x128xf32> -> vector<2x128xf32>
    %141 = arith.addf %139, %140 : vector<2x128xf32>
    %142 = tpu.concatenate %133, %135 in 1 : vector<2x32xf32>, vector<2x32xf32> -> vector<2x64xf32>
    %cst_34 = arith.constant dense<0.000000e+00> : vector<2x128xf32>
    %143 = tpu.matmul %142, %2, %cst_34 {dimension_numbers = #tpu.dot_dimension_numbers<[1], [0], [0], [1], [0, 0, 1, 1], [], []>} : vector<2x64xf32>, vector<64x128xf32>, vector<2x128xf32> -> vector<2x128xf32>
    %144 = arith.addf %143, %7 : vector<2x128xf32>
    %145 = tpu.concatenate %135, %137 in 1 : vector<2x32xf32>, vector<2x32xf32> -> vector<2x64xf32>
    %cst_35 = arith.constant dense<0.000000e+00> : vector<2x128xf32>
    %146 = tpu.matmul %145, %3, %cst_35 {dimension_numbers = #tpu.dot_dimension_numbers<[1], [0], [0], [1], [0, 0, 1, 1], [], []>} : vector<2x64xf32>, vector<64x128xf32>, vector<2x128xf32> -> vector<2x128xf32>
    %147 = arith.addf %146, %10 : vector<2x128xf32>
    %148 = tpu.concatenate %141, %144, %147 in 0 : vector<2x128xf32>, vector<2x128xf32>, vector<2x128xf32> -> vector<6x128xf32>
    %149 = tpu.concatenate %134, %136, %138 in 0 : vector<2x32xf32>, vector<2x32xf32>, vector<2x32xf32> -> vector<6x32xf32>
    %150 = arith.negf %148 : vector<6x128xf32>
    %151 = math.exp %150 : vector<6x128xf32>
    %cst_36 = arith.constant 1.000000e+00 : f32
    %152 = vector.broadcast %cst_36 : f32 to vector<6x128xf32>
    %153 = arith.addf %152, %151 : vector<6x128xf32>
    %154 = arith.divf %152, %153 : vector<6x128xf32>
    %155 = math.tanh %148 : vector<6x128xf32>
    %156 = vector.extract_strided_slice %154 {offsets = [0, 0], sizes = [6, 32], strides = [1, 1]} : vector<6x128xf32> to vector<6x32xf32>
    %157 = vector.extract_strided_slice %154 {offsets = [0, 32], sizes = [6, 32], strides = [1, 1]} : vector<6x128xf32> to vector<6x32xf32>
    %158 = vector.extract_strided_slice %155 {offsets = [0, 64], sizes = [6, 32], strides = [1, 1]} : vector<6x128xf32> to vector<6x32xf32>
    %159 = vector.extract_strided_slice %154 {offsets = [0, 96], sizes = [6, 32], strides = [1, 1]} : vector<6x128xf32> to vector<6x32xf32>
    %160 = arith.mulf %157, %149 : vector<6x32xf32>
    %161 = arith.mulf %156, %158 : vector<6x32xf32>
    %162 = arith.addf %160, %161 : vector<6x32xf32>
    %163 = math.tanh %162 : vector<6x32xf32>
    %164 = arith.mulf %159, %163 : vector<6x32xf32>
    %165 = vector.extract_strided_slice %164 {offsets = [0, 0], sizes = [2, 32], strides = [1, 1]} : vector<6x32xf32> to vector<2x32xf32>
    %166 = vector.extract_strided_slice %162 {offsets = [0, 0], sizes = [2, 32], strides = [1, 1]} : vector<6x32xf32> to vector<2x32xf32>
    %167 = vector.extract_strided_slice %164 {offsets = [2, 0], sizes = [2, 32], strides = [1, 1]} : vector<6x32xf32> to vector<2x32xf32>
    %168 = vector.extract_strided_slice %162 {offsets = [2, 0], sizes = [2, 32], strides = [1, 1]} : vector<6x32xf32> to vector<2x32xf32>
    %169 = vector.extract_strided_slice %164 {offsets = [4, 0], sizes = [2, 32], strides = [1, 1]} : vector<6x32xf32> to vector<2x32xf32>
    %170 = vector.extract_strided_slice %162 {offsets = [4, 0], sizes = [2, 32], strides = [1, 1]} : vector<6x32xf32> to vector<2x32xf32>
    %171 = vector.extract_strided_slice %23 {offsets = [10, 0], sizes = [2, 128], strides = [1, 1]} : vector<16x128xf32> to vector<2x128xf32>
    %cst_37 = arith.constant dense<0.000000e+00> : vector<2x128xf32>
    %172 = tpu.matmul %165, %1, %cst_37 {dimension_numbers = #tpu.dot_dimension_numbers<[1], [0], [0], [1], [0, 0, 1, 1], [], []>} : vector<2x32xf32>, vector<32x128xf32>, vector<2x128xf32> -> vector<2x128xf32>
    %173 = arith.addf %171, %172 : vector<2x128xf32>
    %174 = tpu.concatenate %165, %167 in 1 : vector<2x32xf32>, vector<2x32xf32> -> vector<2x64xf32>
    %cst_38 = arith.constant dense<0.000000e+00> : vector<2x128xf32>
    %175 = tpu.matmul %174, %2, %cst_38 {dimension_numbers = #tpu.dot_dimension_numbers<[1], [0], [0], [1], [0, 0, 1, 1], [], []>} : vector<2x64xf32>, vector<64x128xf32>, vector<2x128xf32> -> vector<2x128xf32>
    %176 = arith.addf %175, %7 : vector<2x128xf32>
    %177 = tpu.concatenate %167, %169 in 1 : vector<2x32xf32>, vector<2x32xf32> -> vector<2x64xf32>
    %cst_39 = arith.constant dense<0.000000e+00> : vector<2x128xf32>
    %178 = tpu.matmul %177, %3, %cst_39 {dimension_numbers = #tpu.dot_dimension_numbers<[1], [0], [0], [1], [0, 0, 1, 1], [], []>} : vector<2x64xf32>, vector<64x128xf32>, vector<2x128xf32> -> vector<2x128xf32>
    %179 = arith.addf %178, %10 : vector<2x128xf32>
    %180 = tpu.concatenate %173, %176, %179 in 0 : vector<2x128xf32>, vector<2x128xf32>, vector<2x128xf32> -> vector<6x128xf32>
    %181 = tpu.concatenate %166, %168, %170 in 0 : vector<2x32xf32>, vector<2x32xf32>, vector<2x32xf32> -> vector<6x32xf32>
    %182 = arith.negf %180 : vector<6x128xf32>
    %183 = math.exp %182 : vector<6x128xf32>
    %cst_40 = arith.constant 1.000000e+00 : f32
    %184 = vector.broadcast %cst_40 : f32 to vector<6x128xf32>
    %185 = arith.addf %184, %183 : vector<6x128xf32>
    %186 = arith.divf %184, %185 : vector<6x128xf32>
    %187 = math.tanh %180 : vector<6x128xf32>
    %188 = vector.extract_strided_slice %186 {offsets = [0, 0], sizes = [6, 32], strides = [1, 1]} : vector<6x128xf32> to vector<6x32xf32>
    %189 = vector.extract_strided_slice %186 {offsets = [0, 32], sizes = [6, 32], strides = [1, 1]} : vector<6x128xf32> to vector<6x32xf32>
    %190 = vector.extract_strided_slice %187 {offsets = [0, 64], sizes = [6, 32], strides = [1, 1]} : vector<6x128xf32> to vector<6x32xf32>
    %191 = vector.extract_strided_slice %186 {offsets = [0, 96], sizes = [6, 32], strides = [1, 1]} : vector<6x128xf32> to vector<6x32xf32>
    %192 = arith.mulf %189, %181 : vector<6x32xf32>
    %193 = arith.mulf %188, %190 : vector<6x32xf32>
    %194 = arith.addf %192, %193 : vector<6x32xf32>
    %195 = math.tanh %194 : vector<6x32xf32>
    %196 = arith.mulf %191, %195 : vector<6x32xf32>
    %197 = vector.extract_strided_slice %196 {offsets = [0, 0], sizes = [2, 32], strides = [1, 1]} : vector<6x32xf32> to vector<2x32xf32>
    %198 = vector.extract_strided_slice %194 {offsets = [0, 0], sizes = [2, 32], strides = [1, 1]} : vector<6x32xf32> to vector<2x32xf32>
    %199 = vector.extract_strided_slice %196 {offsets = [2, 0], sizes = [2, 32], strides = [1, 1]} : vector<6x32xf32> to vector<2x32xf32>
    %200 = vector.extract_strided_slice %194 {offsets = [2, 0], sizes = [2, 32], strides = [1, 1]} : vector<6x32xf32> to vector<2x32xf32>
    %201 = vector.extract_strided_slice %196 {offsets = [4, 0], sizes = [2, 32], strides = [1, 1]} : vector<6x32xf32> to vector<2x32xf32>
    %202 = vector.extract_strided_slice %194 {offsets = [4, 0], sizes = [2, 32], strides = [1, 1]} : vector<6x32xf32> to vector<2x32xf32>
    %203 = vector.extract_strided_slice %23 {offsets = [12, 0], sizes = [2, 128], strides = [1, 1]} : vector<16x128xf32> to vector<2x128xf32>
    %cst_41 = arith.constant dense<0.000000e+00> : vector<2x128xf32>
    %204 = tpu.matmul %197, %1, %cst_41 {dimension_numbers = #tpu.dot_dimension_numbers<[1], [0], [0], [1], [0, 0, 1, 1], [], []>} : vector<2x32xf32>, vector<32x128xf32>, vector<2x128xf32> -> vector<2x128xf32>
    %205 = arith.addf %203, %204 : vector<2x128xf32>
    %206 = tpu.concatenate %197, %199 in 1 : vector<2x32xf32>, vector<2x32xf32> -> vector<2x64xf32>
    %cst_42 = arith.constant dense<0.000000e+00> : vector<2x128xf32>
    %207 = tpu.matmul %206, %2, %cst_42 {dimension_numbers = #tpu.dot_dimension_numbers<[1], [0], [0], [1], [0, 0, 1, 1], [], []>} : vector<2x64xf32>, vector<64x128xf32>, vector<2x128xf32> -> vector<2x128xf32>
    %208 = arith.addf %207, %7 : vector<2x128xf32>
    %209 = tpu.concatenate %199, %201 in 1 : vector<2x32xf32>, vector<2x32xf32> -> vector<2x64xf32>
    %cst_43 = arith.constant dense<0.000000e+00> : vector<2x128xf32>
    %210 = tpu.matmul %209, %3, %cst_43 {dimension_numbers = #tpu.dot_dimension_numbers<[1], [0], [0], [1], [0, 0, 1, 1], [], []>} : vector<2x64xf32>, vector<64x128xf32>, vector<2x128xf32> -> vector<2x128xf32>
    %211 = arith.addf %210, %10 : vector<2x128xf32>
    %212 = tpu.concatenate %205, %208, %211 in 0 : vector<2x128xf32>, vector<2x128xf32>, vector<2x128xf32> -> vector<6x128xf32>
    %213 = tpu.concatenate %198, %200, %202 in 0 : vector<2x32xf32>, vector<2x32xf32>, vector<2x32xf32> -> vector<6x32xf32>
    %214 = arith.negf %212 : vector<6x128xf32>
    %215 = math.exp %214 : vector<6x128xf32>
    %cst_44 = arith.constant 1.000000e+00 : f32
    %216 = vector.broadcast %cst_44 : f32 to vector<6x128xf32>
    %217 = arith.addf %216, %215 : vector<6x128xf32>
    %218 = arith.divf %216, %217 : vector<6x128xf32>
    %219 = math.tanh %212 : vector<6x128xf32>
    %220 = vector.extract_strided_slice %218 {offsets = [0, 0], sizes = [6, 32], strides = [1, 1]} : vector<6x128xf32> to vector<6x32xf32>
    %221 = vector.extract_strided_slice %218 {offsets = [0, 32], sizes = [6, 32], strides = [1, 1]} : vector<6x128xf32> to vector<6x32xf32>
    %222 = vector.extract_strided_slice %219 {offsets = [0, 64], sizes = [6, 32], strides = [1, 1]} : vector<6x128xf32> to vector<6x32xf32>
    %223 = vector.extract_strided_slice %218 {offsets = [0, 96], sizes = [6, 32], strides = [1, 1]} : vector<6x128xf32> to vector<6x32xf32>
    %224 = arith.mulf %221, %213 : vector<6x32xf32>
    %225 = arith.mulf %220, %222 : vector<6x32xf32>
    %226 = arith.addf %224, %225 : vector<6x32xf32>
    %227 = math.tanh %226 : vector<6x32xf32>
    %228 = arith.mulf %223, %227 : vector<6x32xf32>
    %229 = vector.extract_strided_slice %228 {offsets = [0, 0], sizes = [2, 32], strides = [1, 1]} : vector<6x32xf32> to vector<2x32xf32>
    %230 = vector.extract_strided_slice %226 {offsets = [0, 0], sizes = [2, 32], strides = [1, 1]} : vector<6x32xf32> to vector<2x32xf32>
    %231 = vector.extract_strided_slice %228 {offsets = [2, 0], sizes = [2, 32], strides = [1, 1]} : vector<6x32xf32> to vector<2x32xf32>
    %232 = vector.extract_strided_slice %226 {offsets = [2, 0], sizes = [2, 32], strides = [1, 1]} : vector<6x32xf32> to vector<2x32xf32>
    %233 = vector.extract_strided_slice %228 {offsets = [4, 0], sizes = [2, 32], strides = [1, 1]} : vector<6x32xf32> to vector<2x32xf32>
    %234 = vector.extract_strided_slice %226 {offsets = [4, 0], sizes = [2, 32], strides = [1, 1]} : vector<6x32xf32> to vector<2x32xf32>
    %235 = vector.extract_strided_slice %23 {offsets = [14, 0], sizes = [2, 128], strides = [1, 1]} : vector<16x128xf32> to vector<2x128xf32>
    %cst_45 = arith.constant dense<0.000000e+00> : vector<2x128xf32>
    %236 = tpu.matmul %229, %1, %cst_45 {dimension_numbers = #tpu.dot_dimension_numbers<[1], [0], [0], [1], [0, 0, 1, 1], [], []>} : vector<2x32xf32>, vector<32x128xf32>, vector<2x128xf32> -> vector<2x128xf32>
    %237 = arith.addf %235, %236 : vector<2x128xf32>
    %238 = tpu.concatenate %229, %231 in 1 : vector<2x32xf32>, vector<2x32xf32> -> vector<2x64xf32>
    %cst_46 = arith.constant dense<0.000000e+00> : vector<2x128xf32>
    %239 = tpu.matmul %238, %2, %cst_46 {dimension_numbers = #tpu.dot_dimension_numbers<[1], [0], [0], [1], [0, 0, 1, 1], [], []>} : vector<2x64xf32>, vector<64x128xf32>, vector<2x128xf32> -> vector<2x128xf32>
    %240 = arith.addf %239, %7 : vector<2x128xf32>
    %241 = tpu.concatenate %231, %233 in 1 : vector<2x32xf32>, vector<2x32xf32> -> vector<2x64xf32>
    %cst_47 = arith.constant dense<0.000000e+00> : vector<2x128xf32>
    %242 = tpu.matmul %241, %3, %cst_47 {dimension_numbers = #tpu.dot_dimension_numbers<[1], [0], [0], [1], [0, 0, 1, 1], [], []>} : vector<2x64xf32>, vector<64x128xf32>, vector<2x128xf32> -> vector<2x128xf32>
    %243 = arith.addf %242, %10 : vector<2x128xf32>
    %244 = tpu.concatenate %237, %240, %243 in 0 : vector<2x128xf32>, vector<2x128xf32>, vector<2x128xf32> -> vector<6x128xf32>
    %245 = tpu.concatenate %230, %232, %234 in 0 : vector<2x32xf32>, vector<2x32xf32>, vector<2x32xf32> -> vector<6x32xf32>
    %246 = arith.negf %244 : vector<6x128xf32>
    %247 = math.exp %246 : vector<6x128xf32>
    %cst_48 = arith.constant 1.000000e+00 : f32
    %248 = vector.broadcast %cst_48 : f32 to vector<6x128xf32>
    %249 = arith.addf %248, %247 : vector<6x128xf32>
    %250 = arith.divf %248, %249 : vector<6x128xf32>
    %251 = math.tanh %244 : vector<6x128xf32>
    %252 = vector.extract_strided_slice %250 {offsets = [0, 0], sizes = [6, 32], strides = [1, 1]} : vector<6x128xf32> to vector<6x32xf32>
    %253 = vector.extract_strided_slice %250 {offsets = [0, 32], sizes = [6, 32], strides = [1, 1]} : vector<6x128xf32> to vector<6x32xf32>
    %254 = vector.extract_strided_slice %251 {offsets = [0, 64], sizes = [6, 32], strides = [1, 1]} : vector<6x128xf32> to vector<6x32xf32>
    %255 = vector.extract_strided_slice %250 {offsets = [0, 96], sizes = [6, 32], strides = [1, 1]} : vector<6x128xf32> to vector<6x32xf32>
    %256 = arith.mulf %253, %245 : vector<6x32xf32>
    %257 = arith.mulf %252, %254 : vector<6x32xf32>
    %258 = arith.addf %256, %257 : vector<6x32xf32>
    %259 = math.tanh %258 : vector<6x32xf32>
    %260 = arith.mulf %255, %259 : vector<6x32xf32>
    %261 = vector.extract_strided_slice %260 {offsets = [0, 0], sizes = [2, 32], strides = [1, 1]} : vector<6x32xf32> to vector<2x32xf32>
    %262 = vector.extract_strided_slice %258 {offsets = [0, 0], sizes = [2, 32], strides = [1, 1]} : vector<6x32xf32> to vector<2x32xf32>
    %263 = vector.extract_strided_slice %260 {offsets = [2, 0], sizes = [2, 32], strides = [1, 1]} : vector<6x32xf32> to vector<2x32xf32>
    %264 = vector.extract_strided_slice %258 {offsets = [2, 0], sizes = [2, 32], strides = [1, 1]} : vector<6x32xf32> to vector<2x32xf32>
    %265 = vector.extract_strided_slice %260 {offsets = [4, 0], sizes = [2, 32], strides = [1, 1]} : vector<6x32xf32> to vector<2x32xf32>
    %266 = vector.extract_strided_slice %258 {offsets = [4, 0], sizes = [2, 32], strides = [1, 1]} : vector<6x32xf32> to vector<2x32xf32>
    %267 = tpu.concatenate %261, %263 in 1 : vector<2x32xf32>, vector<2x32xf32> -> vector<2x64xf32>
    %cst_49 = arith.constant dense<0.000000e+00> : vector<2x128xf32>
    %268 = tpu.matmul %267, %2, %cst_49 {dimension_numbers = #tpu.dot_dimension_numbers<[1], [0], [0], [1], [0, 0, 1, 1], [], []>} : vector<2x64xf32>, vector<64x128xf32>, vector<2x128xf32> -> vector<2x128xf32>
    %269 = arith.addf %268, %7 : vector<2x128xf32>
    %270 = tpu.concatenate %263, %265 in 1 : vector<2x32xf32>, vector<2x32xf32> -> vector<2x64xf32>
    %cst_50 = arith.constant dense<0.000000e+00> : vector<2x128xf32>
    %271 = tpu.matmul %270, %3, %cst_50 {dimension_numbers = #tpu.dot_dimension_numbers<[1], [0], [0], [1], [0, 0, 1, 1], [], []>} : vector<2x64xf32>, vector<64x128xf32>, vector<2x128xf32> -> vector<2x128xf32>
    %272 = arith.addf %271, %10 : vector<2x128xf32>
    %273 = tpu.concatenate %269, %272 in 0 : vector<2x128xf32>, vector<2x128xf32> -> vector<4x128xf32>
    %274 = tpu.concatenate %264, %266 in 0 : vector<2x32xf32>, vector<2x32xf32> -> vector<4x32xf32>
    %275 = arith.negf %273 : vector<4x128xf32>
    %276 = math.exp %275 : vector<4x128xf32>
    %cst_51 = arith.constant 1.000000e+00 : f32
    %277 = vector.broadcast %cst_51 : f32 to vector<4x128xf32>
    %278 = arith.addf %277, %276 : vector<4x128xf32>
    %279 = arith.divf %277, %278 : vector<4x128xf32>
    %280 = math.tanh %273 : vector<4x128xf32>
    %281 = vector.extract_strided_slice %279 {offsets = [0, 0], sizes = [4, 32], strides = [1, 1]} : vector<4x128xf32> to vector<4x32xf32>
    %282 = vector.extract_strided_slice %279 {offsets = [0, 32], sizes = [4, 32], strides = [1, 1]} : vector<4x128xf32> to vector<4x32xf32>
    %283 = vector.extract_strided_slice %280 {offsets = [0, 64], sizes = [4, 32], strides = [1, 1]} : vector<4x128xf32> to vector<4x32xf32>
    %284 = vector.extract_strided_slice %279 {offsets = [0, 96], sizes = [4, 32], strides = [1, 1]} : vector<4x128xf32> to vector<4x32xf32>
    %285 = arith.mulf %282, %274 : vector<4x32xf32>
    %286 = arith.mulf %281, %283 : vector<4x32xf32>
    %287 = arith.addf %285, %286 : vector<4x32xf32>
    %288 = math.tanh %287 : vector<4x32xf32>
    %289 = arith.mulf %284, %288 : vector<4x32xf32>
    %290 = vector.extract_strided_slice %289 {offsets = [0, 0], sizes = [2, 32], strides = [1, 1]} : vector<4x32xf32> to vector<2x32xf32>
    %291 = vector.extract_strided_slice %287 {offsets = [0, 0], sizes = [2, 32], strides = [1, 1]} : vector<4x32xf32> to vector<2x32xf32>
    %292 = vector.extract_strided_slice %289 {offsets = [2, 0], sizes = [2, 32], strides = [1, 1]} : vector<4x32xf32> to vector<2x32xf32>
    %293 = vector.extract_strided_slice %287 {offsets = [2, 0], sizes = [2, 32], strides = [1, 1]} : vector<4x32xf32> to vector<2x32xf32>
    %294 = tpu.concatenate %290, %292 in 1 : vector<2x32xf32>, vector<2x32xf32> -> vector<2x64xf32>
    %cst_52 = arith.constant dense<0.000000e+00> : vector<2x128xf32>
    %295 = tpu.matmul %294, %3, %cst_52 {dimension_numbers = #tpu.dot_dimension_numbers<[1], [0], [0], [1], [0, 0, 1, 1], [], []>} : vector<2x64xf32>, vector<64x128xf32>, vector<2x128xf32> -> vector<2x128xf32>
    %296 = arith.addf %295, %10 : vector<2x128xf32>
    %297 = arith.negf %296 : vector<2x128xf32>
    %298 = math.exp %297 : vector<2x128xf32>
    %cst_53 = arith.constant 1.000000e+00 : f32
    %299 = vector.broadcast %cst_53 : f32 to vector<2x128xf32>
    %300 = arith.addf %299, %298 : vector<2x128xf32>
    %301 = arith.divf %299, %300 : vector<2x128xf32>
    %302 = math.tanh %296 : vector<2x128xf32>
    %303 = vector.extract_strided_slice %301 {offsets = [0, 0], sizes = [2, 32], strides = [1, 1]} : vector<2x128xf32> to vector<2x32xf32>
    %304 = vector.extract_strided_slice %301 {offsets = [0, 32], sizes = [2, 32], strides = [1, 1]} : vector<2x128xf32> to vector<2x32xf32>
    %305 = vector.extract_strided_slice %302 {offsets = [0, 64], sizes = [2, 32], strides = [1, 1]} : vector<2x128xf32> to vector<2x32xf32>
    %306 = vector.extract_strided_slice %301 {offsets = [0, 96], sizes = [2, 32], strides = [1, 1]} : vector<2x128xf32> to vector<2x32xf32>
    %307 = arith.mulf %304, %293 : vector<2x32xf32>
    %308 = arith.mulf %303, %305 : vector<2x32xf32>
    %309 = arith.addf %307, %308 : vector<2x32xf32>
    %310 = math.tanh %309 : vector<2x32xf32>
    %311 = arith.mulf %306, %310 : vector<2x32xf32>
    %312 = tpu.concatenate %105, %137, %169, %201, %233, %265, %292, %311 in 0 : vector<2x32xf32>, vector<2x32xf32>, vector<2x32xf32>, vector<2x32xf32>, vector<2x32xf32>, vector<2x32xf32>, vector<2x32xf32>, vector<2x32xf32> -> vector<16x32xf32>
    %cst_54 = arith.constant dense<0.000000e+00> : vector<16x128xf32>
    %313 = tpu.matmul %312, %11, %cst_54 {dimension_numbers = #tpu.dot_dimension_numbers<[1], [0], [0], [1], [0, 0, 1, 1], [], []>} : vector<16x32xf32>, vector<32x128xf32>, vector<16x128xf32> -> vector<16x128xf32>
    %314 = vector.broadcast %12 : vector<1x128xf32> to vector<16x128xf32>
    %315 = arith.addf %313, %314 : vector<16x128xf32>
    %c0_55 = arith.constant 0 : index
    %c0_56 = arith.constant 0 : index
    %316 = vector.load %arg3[%c0_55, %c0_56] : memref<16x128xf32, #tpu.memory_space<vmem>>, vector<16x128xf32>
    tpu.vector_store %arg3[%c0_55, %c0_56], %315 {strides = array<i32>} : memref<16x128xf32, #tpu.memory_space<vmem>>, vector<16x128xf32>,
    %317 = tpu.concatenate %261, %290, %311 in 0 : vector<2x32xf32>, vector<2x32xf32>, vector<2x32xf32> -> vector<6x32xf32>
    %c0_57 = arith.constant 0 : index
    %c0_58 = arith.constant 0 : index
    %318 = vector.load %arg4[%c0_57, %c0_58] : memref<6x32xf32, #tpu.memory_space<vmem>>, vector<6x32xf32>
    tpu.vector_store %arg4[%c0_57, %c0_58], %317 {strides = array<i32>} : memref<6x32xf32, #tpu.memory_space<vmem>>, vector<6x32xf32>,
    %319 = tpu.concatenate %262, %291, %309 in 0 : vector<2x32xf32>, vector<2x32xf32>, vector<2x32xf32> -> vector<6x32xf32>
    %c0_59 = arith.constant 0 : index
    %c0_60 = arith.constant 0 : index
    %320 = vector.load %arg5[%c0_59, %c0_60] : memref<6x32xf32, #tpu.memory_space<vmem>>, vector<6x32xf32>
    tpu.vector_store %arg5[%c0_59, %c0_60], %319 {strides = array<i32>} : memref<6x32xf32, #tpu.memory_space<vmem>>, vector<6x32xf32>,
    return
  }
}

</mosaic_0001>

<bundles_post_ra>
// kernel: char_lstm_forward.1
= control target key start
LH: loop header
LB: loop body
LE: loop exit
PB: predicated region body
PF: predicated region fallthrough
CT: control target
= control target key end

     0   :  { %v1822_v0 = vmov 0   ;;  %vm460_vm2 = vcmask 523264   ;;  %s1825_s27 = smov 64   ;;  %vm490_vm7 = vcmask 261120   ;;  %vm612_vm8 = vcmask 1041408   ;;  %s1827_s23 = smov 96   ;;  %s2684_s0 = inlined_call_operand.vmem [shape: s32[16,1], index: 0, kind: input, shape index: {}]   ;;  %s2685_s1 = inlined_call_operand.vmem [shape: f32[128,64], index: 1, kind: input, shape index: {}]   ;;  %s2686_s2 = inlined_call_operand.vmem [shape: f32[288,128], index: 2, kind: input, shape index: {}]   ;;  %s2687_s3 = inlined_call_operand.vmem [shape: f32[16,128], index: 3, kind: output, shape index: {0}]   ;;  %s2688_s5 = inlined_call_operand.vmem [shape: f32[6,32], index: 5, kind: output, shape index: {2}]   ;;  %s2689_s4 = inlined_call_operand.vmem [shape: f32[6,32], index: 4, kind: output, shape index: {1}]  }
   0x1   :  { %1736 = vset.pattern.permute.xlu0 %v1822_v0  ;;  %v55_v1 = vld [vmem:[%s2684_s0] sm:$0xff]  ;;  %v86_v2 = vld [vmem:[%s2685_s1 + $0x78] sm:$0xff]  ;;  %v85_v4 = vld [vmem:[%s2685_s1 + $0x70] sm:$0xff]  ;;  %vm745_vm13 = vcmask 1043456  }
   0x2   :  { %60 = vperm.xlu0 %1736, %v55_v1   ;;  %v1864_v3 = vand.u32 4294901760, %v86_v2  ;;  %v84_v5 = vld [vmem:[%s2685_s1 + $0x68] sm:$0xff]  ;;  %v83_v6 = vld [vmem:[%s2685_s1 + $0x60] sm:$0xff]  ;;  %v1875_v7 = vand.u32 4294901760, %v85_v4  ;;  %v82_v10 = vld [vmem:[%s2685_s1 + $0x58] sm:$0xff] }
   0x3   :  { %v1877_v8 = vand.u32 4294901760, %v84_v5  ;;  %v1879_v9 = vand.u32 4294901760, %v83_v6  ;;  %v81_v11 = vld [vmem:[%s2685_s1 + $0x50] sm:$0xff]  ;;  %v80_v12 = vld [vmem:[%s2685_s1 + $0x48] sm:$0xff]  ;;  %v1893_v14 = vand.u32 4294901760, %v82_v10  ;;  %v79_v17 = vld [vmem:[%s2685_s1 + $0x40] sm:$0xff] }
   0x4   :  { %v1891_v13 = vsub.f32 %v86_v2, %v1864_v3  ;;  %88 = vmatpush.msra.mxu0 %v1864_v3  ;;  %v1896_v15 = vand.u32 4294901760, %v81_v11  ;;  %v1898_v16 = vand.u32 4294901760, %v80_v12  ;;  %301 = vmatpush.msra.mxu3 %v1864_v3  ;;  %v1905_v18 = vsub.f32 %v85_v4, %v1875_v7  ;;  %v56_v25 = vld [vmem:[%s2684_s0 + $0x8] sm:$0xff]  ;;  %v78_v35 = vld [vmem:[%s2685_s1 + $0x38] sm:$0xff]  ;;  %v77_v39 = vld [vmem:[%s2685_s1 + $0x30] sm:$0xff] }
   0x5   :  { %v1908_v19 = vsub.f32 %v84_v5, %v1877_v8  ;;  %v1911_v20 = vsub.f32 %v83_v6, %v1879_v9  ;;  %v1913_v21 = vand.u32 4294901760, %v79_v17  ;;  %v1917_v23 = vsub.f32 %v82_v10, %v1893_v14  ;;  %v76_v40 = vld [vmem:[%s2685_s1 + $0x28] sm:$0xff]  ;;  %v75_v43 = vld [vmem:[%s2685_s1 + $0x20] sm:$0xff]  ;;  %v74_v50 = vld [vmem:[%s2685_s1 + $0x18] sm:$0xff] }
   0x6   :  { %v138_v22 = vand.u32 4294901760, %v1891_v13  ;;  %v1920_v24 = vsub.f32 %v81_v11, %v1896_v15  ;;  %90 = vmatpush.msra.mxu0 %v1875_v7  ;;  %243 = vmatpush.msra.mxu2 %v1891_v13  ;;  %v144_v26 = vand.u32 4294901760, %v1905_v18  ;;  %v1931_v29 = vsub.f32 %v80_v12, %v1898_v16  ;;  %v73_v57 = vld [vmem:[%s2685_s1 + $0x10] sm:$0xff]  ;;  %v72_v63 = vld [vmem:[%s2685_s1 + $0x8] sm:$0xff]  ;;  %v71_v6 = vld [vmem:[%s2685_s1] sm:$0xff]  ;;  %s1826_s1 = smov 32  }
   0x7   :  { %v150_v27 = vand.u32 4294901760, %v1908_v19  ;;  %v156_v28 = vand.u32 4294901760, %v1911_v20  ;;  %303 = vmatpush.msra.mxu3 %v1875_v7  ;;  %v162_v31 = vand.u32 4294901760, %v1917_v23  ;;  %v1947_v34 = vsub.f32 %v79_v17, %v1913_v21 }
   0x8   :  { %v139_v30 = vsub.f32 %v1891_v13, %v138_v22  ;;  %92 = vmatpush.msra.mxu0 %v1877_v8  ;;  %246 = vmatpush.msra.mxu2 %v1905_v18  ;;  %v145_v32 = vsub.f32 %v1905_v18, %v144_v26  ;;  %v168_v38 = vand.u32 4294901760, %v1920_v24  ;;  %v174_v42 = vand.u32 4294901760, %v1931_v29 }
   0x9   :  { %v151_v33 = vsub.f32 %v1908_v19, %v150_v27  ;;  %305 = vmatpush.msra.mxu3 %v1877_v8  ;;  %v157_v37 = vsub.f32 %v1911_v20, %v156_v28  ;;  %v163_v45 = vsub.f32 %v1917_v23, %v162_v31  ;;  %v1973_v46 = vand.u32 4294901760, %v78_v35 }
   0xa   :  { %63 = vperm.xlu0 %1736, %v56_v25   ;;  %v140_v36 = vand.u32 4294901760, %v139_v30  ;;  %94 = vmatpush.msra.mxu0 %v1879_v9  ;;  %v146_v41 = vand.u32 4294901760, %v145_v32  ;;  %v180_v47 = vand.u32 4294901760, %v1947_v34  ;;  %v1977_v48 = vand.u32 4294901760, %v77_v39 }
   0xb   :  { %249 = vmatpush.msra.mxu2 %v1908_v19  ;;  %307 = vmatpush.msra.mxu3 %v1879_v9  ;;  %v152_v44 = vand.u32 4294901760, %v151_v33  ;;  %v1979_v49 = vand.u32 4294901760, %v76_v40  ;;  %v158_v51 = vand.u32 4294901760, %v157_v37  ;;  %v169_v52 = vsub.f32 %v1920_v24, %v168_v38 }
   0xc   :  { %141 = vmatpush.msra.mxu1 %v140_v36  ;;  %96 = vmatpush.msra.mxu0 %v1893_v14  ;;  %v1990_v53 = vsub.f32 %v78_v35, %v1973_v46  ;;  %v1993_v54 = vand.u32 4294901760, %v75_v43  ;;  %v175_v55 = vsub.f32 %v1931_v29, %v174_v42  ;;  %v1999_v56 = vsub.f32 %v77_v39, %v1977_v48 }
   0xd   :  { %252 = vmatpush.msra.mxu2 %v1911_v20  ;;  %309 = vmatpush.msra.mxu3 %v1893_v14  ;;  %v164_v58 = vand.u32 4294901760, %v163_v45  ;;  %v2008_v60 = vsub.f32 %v76_v40, %v1979_v49  ;;  %v2011_v61 = vand.u32 4294901760, %v74_v50  ;;  %v181_v62 = vsub.f32 %v1947_v34, %v180_v47 }
   0xe   :  { %147 = vmatpush.msra.mxu1 %v146_v41  ;;  %98 = vmatpush.msra.mxu0 %v1896_v15  ;;  %v186_v59 = vand.u32 4294901760, %v1990_v53  ;;  %v170_v0 = vand.u32 4294901760, %v169_v52  ;;  %v192_v1 = vand.u32 4294901760, %v1999_v56  ;;  %v2023_v2 = vsub.f32 %v75_v43, %v1993_v54 }
   0xf   :  { %255 = vmatpush.msra.mxu2 %v1917_v23  ;;  %311 = vmatpush.msra.mxu3 %v1896_v15  ;;  %v2026_v4 = vand.u32 4294901760, %v73_v57  ;;  %v176_v5 = vand.u32 4294901760, %v175_v55  ;;  %v198_v11 = vand.u32 4294901760, %v2008_v60  ;;  %v2038_v12 = vsub.f32 %v74_v50, %v2011_v61 }
  0x10   :  { %153 = vmatpush.msra.mxu1 %v152_v44  ;;  %100 = vmatpush.msra.mxu0 %v1898_v16  ;;  %v187_v10 = vsub.f32 %v1990_v53, %v186_v59  ;;  %v2041_v17 = vand.u32 4294901760, %v72_v63  ;;  %v182_v25 = vand.u32 4294901760, %v181_v62  ;;  %v193_v30 = vsub.f32 %v1999_v56, %v192_v1 }
  0x11   :  { %258 = vmatpush.msra.mxu2 %v1920_v24  ;;  %313 = vmatpush.msra.mxu3 %v1898_v16  ;;  %v204_v32 = vand.u32 4294901760, %v2023_v2  ;;  %v2050_v33 = vsub.f32 %v73_v57, %v2026_v4  ;;  %v2053_v35 = vand.u32 4294901760, %v71_v6  ;;  %v199_v37 = vsub.f32 %v2008_v60, %v198_v11 }
  0x12   :  { %159 = vmatpush.msra.mxu1 %v158_v51  ;;  %102 = vmatpush.msra.mxu0 %v1913_v21  ;;  %v188_v36 = vand.u32 4294901760, %v187_v10  ;;  %v210_v39 = vand.u32 4294901760, %v2038_v12  ;;  %v2062_v40 = vsub.f32 %v72_v63, %v2041_v17  ;;  %v194_v41 = vand.u32 4294901760, %v193_v30 }
  0x13   :  { %261 = vmatpush.msra.mxu2 %v1931_v29  ;;  %315 = vmatpush.msra.mxu3 %v1913_v21  ;;  %v205_v43 = vsub.f32 %v2023_v2, %v204_v32  ;;  %v216_v44 = vand.u32 4294901760, %v2050_v33  ;;  %v2072_v45 = vsub.f32 %v71_v6, %v2053_v35  ;;  %v200_v50 = vand.u32 4294901760, %v199_v37  ;;  %v2157_v29 = vld [vmem:[%s2686_s2 + $0x58] sm:$0xff] }
  0x14   :  { %165 = vmatpush.msra.mxu1 %v164_v58  ;;  %104 = vmatpush.msra.mxu0 %v1973_v46  ;;  %v211_v51 = vsub.f32 %v2038_v12, %v210_v39  ;;  %v222_v52 = vand.u32 4294901760, %v2062_v40  ;;  %v1824_v13 = vmov 0.0  }
  0x15   :  { %264 = vmatpush.msra.mxu2 %v1947_v34  ;;  %317 = vmatpush.msra.mxu3 %v1973_v46  ;;  %v206_v55 = vand.u32 4294901760, %v205_v43  ;;  %v217_v57 = vsub.f32 %v2050_v33, %v216_v44  ;;  %v228_v58 = vand.u32 4294901760, %v2072_v45  ;;  %v21_v34 = vld [vmem:[%s2686_s2 + $0x20] sm:$0xff] }
  0x16   :  { %171 = vmatpush.msra.mxu1 %v170_v0  ;;  %106 = vmatpush.msra.mxu0 %v1977_v48  ;;  %v212_v62 = vand.u32 4294901760, %v211_v51  ;;  %v223_v63 = vsub.f32 %v2062_v40, %v222_v52 }
  0x17   :  { %267 = vmatpush.msra.mxu2 %v1990_v53  ;;  %319 = vmatpush.msra.mxu3 %v1977_v48  ;;  %v218_v0 = vand.u32 4294901760, %v217_v57  ;;  %v2193_v53 = vld [vmem:[%s2686_s2 + $0x40] sm:$0xff] }
  0x18   :  { %177 = vmatpush.msra.mxu1 %v176_v5  ;;  %108 = vmatpush.msra.mxu0 %v1979_v49  ;;  %v229_v5 = vsub.f32 %v2072_v45, %v228_v58  ;;  %v224_v6 = vand.u32 4294901760, %v223_v63 }
  0x19   :  { %270 = vmatpush.msra.mxu2 %v1999_v56  ;;  %321 = vmatpush.msra.mxu3 %v1979_v49 }
  0x1a   :  { %183 = vmatpush.msra.mxu1 %v182_v25  ;;  %110 = vmatpush.msra.mxu0 %v1993_v54  ;;  %v230_v10 = vand.u32 4294901760, %v229_v5 }
  0x1b   :  { %273 = vmatpush.msra.mxu2 %v2008_v60  ;;  %323 = vmatpush.msra.mxu3 %v1993_v54 }
  0x1c   :  { %189 = vmatpush.msra.mxu1 %v188_v36  ;;  %112 = vmatpush.msra.mxu0 %v2011_v61 }
  0x1d   :  { %276 = vmatpush.msra.mxu2 %v2023_v2  ;;  %325 = vmatpush.msra.mxu3 %v2011_v61 }
  0x1e   :  { %195 = vmatpush.msra.mxu1 %v194_v41  ;;  %114 = vmatpush.msra.mxu0 %v2026_v4 }
  0x1f   :  { %279 = vmatpush.msra.mxu2 %v2038_v12  ;;  %327 = vmatpush.msra.mxu3 %v2026_v4 }
  0x20   :  { %201 = vmatpush.msra.mxu1 %v200_v50  ;;  %116 = vmatpush.msra.mxu0 %v2041_v17 }
  0x21   :  { %282 = vmatpush.msra.mxu2 %v2050_v33  ;;  %329 = vmatpush.msra.mxu3 %v2041_v17 }
  0x22   :  { %207 = vmatpush.msra.mxu1 %v206_v55  ;;  %118 = vmatpush.msra.mxu0 %v2053_v35 }
  0x23   :  { %285 = vmatpush.msra.mxu2 %v2062_v40  ;;  %331 = vmatpush.msra.mxu3 %v2053_v35 }
  0x24   :  { %348 = vmatpush.msrb.mxu0 %v138_v22  ;;  %213 = vmatpush.msra.mxu1 %v212_v62 }
  0x25   :  { %288 = vmatpush.msra.mxu2 %v2072_v45  ;;  %506 = vmatpush.msrb.mxu3 %v2157_v29 }
  0x26   :  { %352 = vmatpush.msrb.mxu0 %v144_v26  ;;  %219 = vmatpush.msra.mxu1 %v218_v0 }
  0x28   :  { %356 = vmatpush.msrb.mxu0 %v150_v27  ;;  %225 = vmatpush.msra.mxu1 %v224_v6  ;;  %v24_v27 = vld [vmem:[%s2686_s2 + $0x38] sm:$0xff] }
  0x29   :  { %475 = vmatpush.msrb.mxu2 %v24_v27  ;;  %v2257_v27 = vld [vmem:[%s2686_s2 + $0x70] sm:$0xff] }
  0x2a   :  { %360 = vmatpush.msrb.mxu0 %v156_v28  ;;  %231 = vmatpush.msra.mxu1 %v230_v10  ;;  %v23_v28 = vld [vmem:[%s2686_s2 + $0x30] sm:$0xff] }
  0x2b   :  { %476 = vmatpush.msrb.mxu2 %v23_v28  ;;  %v2264_v28 = vld [vmem:[%s2686_s2 + $0x68] sm:$0xff] }
  0x2c   :  { %419 = vmatpush.msrb.mxu1 %v1864_v3  ;;  %364 = vmatpush.msrb.mxu0 %v162_v31  ;;  %v57_v3 = vlaneseq  ;;  %v22_v31 = vld [vmem:[%s2686_s2 + $0x28] sm:$0xff] }
  0x2d   :  { %477 = vmatpush.msrb.mxu2 %v22_v31 }
  0x2e   :  { %421 = vmatpush.msrb.mxu1 %v1875_v7  ;;  %368 = vmatpush.msrb.mxu0 %v168_v38  ;;  %v58_v7 = vand.u32 127, %v57_v3  ;;  %v2169_v38 = vld [vmem:[%s2686_s2 + $0x50] sm:$0xff] }
  0x2f   :  { %478 = vmatpush.msrb.mxu2 %v21_v34  ;;  %507 = vmatpush.msrb.mxu3 %v2169_v38 }
  0x30   :  { %423 = vmatpush.msrb.mxu1 %v1877_v8  ;;  %372 = vmatpush.msrb.mxu0 %v174_v42  ;;  %v20_v42 = vld [vmem:[%s2686_s2 + $0x18] sm:$0xff] }
  0x31   :  { %479 = vmatpush.msrb.mxu2 %v20_v42  ;;  %v2274_v42 = vld [vmem:[%s2686_s2 + $0x60] sm:$0xff] }
  0x32   :  { %425 = vmatpush.msrb.mxu1 %v1879_v9  ;;  %376 = vmatpush.msrb.mxu0 %v180_v47  ;;  %v1823_v9 = vmov 1.0   ;;  %v2181_v47 = vld [vmem:[%s2686_s2 + $0x48] sm:$0xff] }
  0x33   :  { %508 = vmatpush.msrb.mxu3 %v2181_v47 }
  0x34   :  { %427 = vmatpush.msrb.mxu1 %v1893_v14  ;;  %380 = vmatpush.msrb.mxu0 %v186_v59 }
  0x35   :  { %509 = vmatpush.msrb.mxu3 %v2193_v53 }
  0x36   :  { %429 = vmatpush.msrb.mxu1 %v1896_v15  ;;  %384 = vmatpush.msrb.mxu0 %v192_v1 }
  0x38   :  { %431 = vmatpush.msrb.mxu1 %v1898_v16  ;;  %388 = vmatpush.msrb.mxu0 %v198_v11 }
  0x3a   :  { %433 = vmatpush.msrb.mxu1 %v1913_v21  ;;  %392 = vmatpush.msrb.mxu0 %v204_v32 }
  0x3c   :  { %435 = vmatpush.msrb.mxu1 %v1973_v46  ;;  %396 = vmatpush.msrb.mxu0 %v210_v39  ;;  %v19_v46 = vld [vmem:[%s2686_s2 + $0x10] sm:$0xff] }
  0x3d   :  { %480 = vmatpush.msrb.mxu2 %v19_v46 }
  0x3e   :  { %437 = vmatpush.msrb.mxu1 %v1977_v48  ;;  %400 = vmatpush.msrb.mxu0 %v216_v44  ;;  %v18_v48 = vld [vmem:[%s2686_s2 + $0x8] sm:$0xff]  ;;  %v2209_v44 = vld [vmem:[%s2686_s2 + $0xe0] ss:$0 sm:$0xff] }
  0x3f   :  { %481 = vmatpush.msrb.mxu2 %v18_v48 }
  0x40   :  { %439 = vmatpush.msrb.mxu1 %v1979_v49  ;;  %404 = vmatpush.msrb.mxu0 %v222_v52  ;;  %v17_v49 = vld [vmem:[%s2686_s2] sm:$0xff] }
  0x41   :  { %482 = vmatpush.msrb.mxu2 %v17_v49 }
  0x42   :  { %441 = vmatpush.msrb.mxu1 %v1993_v54  ;;  %408 = vmatpush.msrb.mxu0 %v228_v58 }
  0x44   :  { %443 = vmatpush.msrb.mxu1 %v2011_v61 }
  0x46   :  { %445 = vmatpush.msrb.mxu1 %v2026_v4 }
  0x48   :  { %447 = vmatpush.msrb.mxu1 %v2041_v17 }
  0x4a   :  { %449 = vmatpush.msrb.mxu1 %v2053_v35 }
  0x74   :  { %v61_v8 = vpop.permute.xlu0 %60 }
  0x75   :  { %vm65_vm0 = vcmp.eq.s32.totalorder %v61_v8, %v58_v7 }
  0x76   :  { %1687 = vmatmul.msk.f32.vlgmr.msra.gmra.mxu1 %vm65_vm0, %v1823_v9  ;;  %v1685_v14 = vsel %vm65_vm0, 1.0, %v1824_v13 }
  0x77   :  { %v120_v15 = vsub.f32 %v1685_v14, %v1685_v14 }
  0x79   :  { %291 = vmatmul.f32.vlgmr.msra.gmra.mxu2 %v120_v15  ;;  %v121_v16 = vand.u32 4294901760, %v120_v15 }
  0x7b   :  { %335 = vmatmul.f32.vlgmr.msra.gmra.mxu3 %v121_v16  ;;  %v122_v18 = vsub.f32 %v120_v15, %v121_v16 }
  0x7c   :  { %v64_v19 = vpop.permute.xlu0 %63  ;;  %569 = vmatpush.msra.mxu3 %v2157_v29 }
  0x7d   :  { %vm66_vm1 = vcmp.eq.s32.totalorder %v64_v19, %v58_v7  ;;  %v123_v20 = vand.u32 4294901760, %v122_v18 }
  0x7e   :  { %1688 = vmatmul.msk.f32.gmra.mxu1 %vm66_vm1, %v1823_v9  ;;  %v1686_v21 = vsel %vm66_vm1, 1.0, %v1824_v13  ;;  %570 = vmatpush.msra.mxu3 %v2169_v38 }
  0x7f   :  { %124 = vmatmul.f32.vlgmr.msra.gmra.mxu0 %v123_v20  ;;  %v128_v22 = vsub.f32 %v1686_v21, %v1686_v21  ;;  %v2224_v21 = vld [vmem:[%s2686_s2 + $0x98] sm:$0xff] }
  0x80   :  { %571 = vmatpush.msra.mxu3 %v2181_v47  ;;  %594 = vmatpush.msra.mxu2 %v2224_v21 }
  0x81   :  { %296 = vmatmul.f32.gmra.mxu2 %v128_v22  ;;  %v129_v23 = vand.u32 4294901760, %v128_v22  ;;  %698 = vmatpush.msra.mxu0 %v2224_v21 }
  0x82   :  { %572 = vmatpush.msra.mxu3 %v2193_v53 }
  0x83   :  { %341 = vmatmul.f32.gmra.mxu3 %v129_v23  ;;  %v130_v24 = vsub.f32 %v128_v22, %v129_v23  ;;  %v2229_v22 = vld [vmem:[%s2686_s2 + $0x90] sm:$0xff]  ;;  %v2236_v23 = vld [vmem:[%s2686_s2 + $0x88] sm:$0xff] }
  0x84   :  { %595 = vmatpush.msra.mxu2 %v2229_v22  ;;  %699 = vmatpush.msra.mxu0 %v2229_v22 }
  0x85   :  { %v131_v26 = vand.u32 4294901760, %v130_v24  ;;  %v2243_v24 = vld [vmem:[%s2686_s2 + $0x80] sm:$0xff] }
  0x86   :  { %1691 = vmatmul.msk.f32.vlgmr.msrb.gmra.mxu1 %vm65_vm0, %v1823_v9  ;;  %596 = vmatpush.msra.mxu2 %v2236_v23 }
  0x87   :  { %132 = vmatmul.f32.gmra.mxu0 %v131_v26  ;;  %v2250_v26 = vld [vmem:[%s2686_s2 + $0x78] sm:$0xff] }
  0x88   :  { %700 = vmatpush.msra.mxu0 %v2236_v23  ;;  %597 = vmatpush.msra.mxu2 %v2243_v24 }
  0x8a   :  { %701 = vmatpush.msra.mxu0 %v2243_v24  ;;  %598 = vmatpush.msra.mxu2 %v2250_v26 }
  0x8b   :  { %510 = vmatmul.f32.vlgmr.msrb.gmra.mxu3 %v1824_v13 }
  0x8c   :  { %669 = vmatpush.msrb.mxu3 %v2157_v29  ;;  %702 = vmatpush.msra.mxu0 %v2250_v26 }
  0x8d   :  { %599 = vmatpush.msra.mxu2 %v2257_v27 }
  0x8e   :  { %1692 = vmatmul.msk.f32.gmra.mxu1 %vm66_vm1, %v1823_v9  ;;  %670 = vmatpush.msrb.mxu3 %v2169_v38 }
  0x8f   :  { %1689 = vmatmul.msk.f32.vlgmr.msrb.gmra.mxu0 %vm65_vm0, %v1823_v9  ;;  %600 = vmatpush.msra.mxu2 %v2264_v28 }
  0x90   :  { %671 = vmatpush.msrb.mxu3 %v2181_v47  ;;  %703 = vmatpush.msra.mxu0 %v2257_v27 }
  0x91   :  { %601 = vmatpush.msra.mxu2 %v2274_v42 }
  0x92   :  { %672 = vmatpush.msrb.mxu3 %v2193_v53  ;;  %704 = vmatpush.msra.mxu0 %v2264_v28 }
  0x94   :  { %705 = vmatpush.msra.mxu0 %v2274_v42 }
  0x96   :  { %1054 = vmatpush.msrb.mxu0 %v2157_v29 }
  0x97   :  { %1690 = vmatmul.msk.f32.gmra.mxu0 %vm66_vm1, %v1823_v9 }
  0x98   :  { %1055 = vmatpush.msrb.mxu0 %v2169_v38 }
  0x9a   :  { %1056 = vmatpush.msrb.mxu0 %v2181_v47 }
  0x9c   :  { %1057 = vmatpush.msrb.mxu0 %v2193_v53 }
  0xf3   :  { %v234_v54 = vpop.f32.mrf.mxu1 }
  0xfb   :  { %v238_v59 = vpop.f32.mrf.mxu1 }
  0xfc   :  { %v125_v56 = vpop.f32.mrf.mxu0  ;;  %v292_v61 = vpop.f32.mrf.mxu2 }
  0xfd   :  { %v235_v60 = vadd.f32 %v234_v54, %v125_v56  ;;  %v2302_v54 = vld [vmem:[%s2686_s2 + $0xe8] ss:$0 sm:$0xff] }
  0xfe   :  { %v336_v4 = vpop.f32.mrf.mxu3 }
  0xff   :  { %v293_v2 = vadd.f32 %v292_v61, %v235_v60 }
 0x101   :  { %v337_v11 = vadd.f32 %v336_v4, %v293_v2 }
 0x103   :  { %v452_v17 = vpop.f32.mrf.mxu1 }
 0x104   :  { %v133_v1 = vpop.f32.mrf.mxu0  ;;  %v297_v32 = vpop.f32.mrf.mxu2 }
 0x105   :  { %v239_v12 = vadd.f32 %v238_v59, %v133_v1 }
 0x106   :  { %v342_v36 = vpop.f32.mrf.mxu3 }
 0x107   :  { %v298_v33 = vadd.f32 %v297_v32, %v239_v12 }
 0x109   :  { %v343_v37 = vadd.f32 %v342_v36, %v298_v33 }
 0x10b   :  { %v456_v41 = vpop.f32.mrf.mxu1 }
 0x10c   :  { %v411_v25 = vpop.f32.mrf.mxu0 }
 0x10d   :  { %v412_v30 = vadd.f32 %v411_v25, %v337_v11 }
 0x10e   :  { %v511_v50 = vpop.f32.mrf.mxu3 }
 0x10f   :  { %v453_v35 = vadd.f32 %v452_v17, %v412_v30 }
 0x111   :  { %1693 = vmatmul.msk.f32.vlgmr.msrb.gmra.mxu2 %vm460_vm2, %v453_v35 }
 0x112   :  { %802 = vmatpush.msrb.mxu2 %v2157_v29 }
 0x114   :  { %v415_v39 = vpop.f32.mrf.mxu0  ;;  %803 = vmatpush.msrb.mxu2 %v2169_v38 }
 0x115   :  { %v416_v40 = vadd.f32 %v415_v39, %v343_v37 }
 0x116   :  { %804 = vmatpush.msrb.mxu2 %v2181_v47 }
 0x117   :  { %v457_v43 = vadd.f32 %v456_v41, %v416_v40 }
 0x118   :  { %805 = vmatpush.msrb.mxu2 %v2193_v53 }
 0x119   :  { %1694 = vmatmul.msk.f32.gmra.mxu2 %vm460_vm2, %v457_v43 }
 0x194   :  { %v484_v45 = vpop.f32.mrf.mxu2 }
 0x195   :  { %v2212_v51 = vadd.f32 %v2209_v44, %v484_v45 }
 0x197   :  { %v514_v52 = vadd.f32 %v511_v50, %v2212_v51 }
 0x199   :  { %1741 = vtanh.f32 %v514_v52  ;;  %v1695_v57 = vmul.f32 -1.442695, %v514_v52 }
 0x19b   :  { %1743 = vpow2.f32 %v1695_v57 }
 0x19c   :  { %v2297_v49 = vpop.f32.mrf.mxu2 }
 0x19f   :  { %v1742_v55 = vpop.eup %1741 }
 0x1a0   :  { %537 = vrot.lane.b32.xlu1 %v1742_v55, %s1825_s27 }
 0x1a1   :  { %v1744_v58 = vpop.eup %1743 }
 0x1a2   :  { %v518_v62 = vadd.f32 1.0, %v1744_v58 }
 0x1a4   :  { %1745 = vrcp.f32 %v518_v62  ;;  %v530_v3 = vand.u32 2147483648, %v518_v62  ;;  %vm524_vm4 = vweird.f32 %v518_v62  ;;  %v528_v7 = vand.u32 2147483647, %v518_v62 }
 0x1a6   :  { %v531_v9 = vor.u32 1.1754944e-38, %v530_v3  ;;  %vm529_vm6 = vcmp.eq.f32.partialorder %v528_v7, 8.507059e+37  ;;  %v2344_v3 = vld [vmem:[%s2686_s2 + $0xb8] sm:$0xff]  ;;  %v2351_v7 = vld [vmem:[%s2686_s2 + $0xb0] sm:$0xff] }
 0x1aa   :  { %v1746_v63 = vpop.eup %1745 }
 0x1ab   :  { %v520_v0 = vmul.f32 %v1746_v63, %v518_v62  ;;  %vm525_vm3 = vweird.f32 %v1746_v63 }
 0x1ac   :  { %vm526_vm5 = vmor %vm524_vm4, %vm525_vm3 }
 0x1ad   :  { %v521_v5 = vsub.f32 1.0, %v520_v0  ;;  %v2318_v0 = vld [vmem:[%s2686_s2 + $0xd8] sm:$0xff] }
 0x1ae   :  { %723 = vmatpush.msra.mxu1 %v2318_v0 }
 0x1af   :  { %v522_v6 = vmul.f32 %v1746_v63, %v521_v5  ;;  %v2323_v5 = vld [vmem:[%s2686_s2 + $0xd0] sm:$0xff] }
 0x1b0   :  { %724 = vmatpush.msra.mxu1 %v2323_v5 }
 0x1b1   :  { %v523_v10 = vadd.f32 %v1746_v63, %v522_v6  ;;  %v2330_v6 = vld [vmem:[%s2686_s2 + $0xc8] sm:$0xff] }
 0x1b2   :  { %725 = vmatpush.msra.mxu1 %v2330_v6 }
 0x1b3   :  { %v527_v8 = vsel %vm526_vm5, %v1746_v63, %v523_v10  ;;  %v2337_v10 = vld [vmem:[%s2686_s2 + $0xc0] sm:$0xff] }
 0x1b4   :  { %v532_v14 = vsel %vm529_vm6, %v531_v9, %v527_v8  ;;  %726 = vmatpush.msra.mxu1 %v2337_v10 }
 0x1b5   :  { %v535_v16 = vmul.f32 0.0, %v532_v14 }
 0x1b6   :  { %727 = vmatpush.msra.mxu1 %v2344_v3 }
 0x1b8   :  { %728 = vmatpush.msra.mxu1 %v2351_v7 }
 0x212   :  { %v538_v13 = vpop.permute.xlu1 %537 }
 0x213   :  { %v540_v15 = vmul.f32 %v538_v13, %v532_v14 }
 0x215   :  { %542 = vrot.lane.b32.xlu1 %v540_v15, %s1826_s1  ;;  %v2369_v15 = vld [vmem:[%s2686_s2 + $0xa0] sm:$0xff] }
 0x287   :  { %v543_v18 = vpop.permute.xlu1 %542 }
 0x288   :  { %v2217_v19 = vadd.f32 %v543_v18, %v535_v16 }
 0x28a   :  { %1747 = vtanh.f32 %v2217_v19  ;;  %v614_v55 = vsel %vm612_vm8, %v2217_v19, 0.0 }
 0x290   :  { %v1748_v20 = vpop.eup %1747 }
 0x291   :  { %548 = vrot.lane.b32.xlu2 %v1748_v20, %s1825_s27 }
 0x2eb   :  { %v549_v31 = vpop.permute.xlu2 %548 }
 0x2ec   :  { %v551_v34 = vmul.f32 %v549_v31, %v532_v14  ;;  %v2362_v14 = vld [vmem:[%s2686_s2 + $0xa8] sm:$0xff] }
 0x2ed   :  { %729 = vmatpush.msra.mxu1 %v2362_v14 }
 0x2ee   :  { %553 = vrot.lane.b32.xlu2 %v551_v34, %s1826_s1 }
 0x2ef   :  { %730 = vmatpush.msra.mxu1 %v2369_v15 }
 0x2f1   :  { %957 = vmatpush.msrb.mxu1 %v2224_v21 }
 0x2f3   :  { %958 = vmatpush.msrb.mxu1 %v2229_v22 }
 0x2f5   :  { %959 = vmatpush.msrb.mxu1 %v2236_v23 }
 0x2f7   :  { %960 = vmatpush.msrb.mxu1 %v2243_v24 }
 0x2f9   :  { %961 = vmatpush.msrb.mxu1 %v2250_v26 }
 0x2fb   :  { %962 = vmatpush.msrb.mxu1 %v2257_v27 }
 0x2fd   :  { %963 = vmatpush.msrb.mxu1 %v2264_v28 }
 0x2ff   :  { %964 = vmatpush.msrb.mxu1 %v2274_v42 }
 0x348   :  { %v554_v46 = vpop.permute.xlu2 %553 }
 0x349   :  { %v582_v48 = vsel %vm490_vm7, %v554_v46, 0.0  ;;  %1696 = vmatmul.msk.f32.vlgmr.msra.gmra.mxu3 %vm490_vm7, %v554_v46  ;;  %v2405_v46 = vld [vmem:[%s2686_s2 + $0xf0] ss:$0 sm:$0xff] }
 0x34a   :  { %1697 = vmatmul.msk.f32.vlgmr.msra.gmra.mxu2 %vm460_vm2, %v582_v48  ;;  %831 = vmatpush.msra.mxu3 %v2224_v21 }
 0x34b   :  { %854 = vmatpush.msra.mxu2 %v2318_v0 }
 0x34c   :  { %832 = vmatpush.msra.mxu3 %v2229_v22 }
 0x34d   :  { %855 = vmatpush.msra.mxu2 %v2323_v5 }
 0x34e   :  { %833 = vmatpush.msra.mxu3 %v2236_v23 }
 0x34f   :  { %856 = vmatpush.msra.mxu2 %v2330_v6 }
 0x350   :  { %834 = vmatpush.msra.mxu3 %v2243_v24 }
 0x351   :  { %857 = vmatpush.msra.mxu2 %v2337_v10 }
 0x352   :  { %835 = vmatpush.msra.mxu3 %v2250_v26 }
 0x353   :  { %858 = vmatpush.msra.mxu2 %v2344_v3 }
 0x354   :  { %836 = vmatpush.msra.mxu3 %v2257_v27 }
 0x355   :  { %859 = vmatpush.msra.mxu2 %v2351_v7 }
 0x356   :  { %837 = vmatpush.msra.mxu3 %v2264_v28 }
 0x357   :  { %860 = vmatpush.msra.mxu2 %v2362_v14 }
 0x358   :  { %838 = vmatpush.msra.mxu3 %v2274_v42 }
 0x359   :  { %861 = vmatpush.msra.mxu2 %v2369_v15 }
 0x3cc   :  { %v574_v56 = vpop.f32.mrf.mxu3 }
 0x3cd   :  { %v578_v59 = vrot.slane %v574_v56, 6  ;;  %v603_v60 = vpop.f32.mrf.mxu2 }
 0x3ce   :  { %v604_v61 = vadd.f32 %v2302_v54, %v603_v60 }
 0x3cf   :  { %v580_v1 = vadd.f32 %v578_v59, %v2212_v51 }
 0x3d0   :  { %v610_v2 = vrot.slane %v604_v61, 6 }
 0x3d1   :  { %v607_v4 = vrot.slane %v580_v1, 2 }
 0x3d3   :  { %v613_v11 = vsel %vm612_vm8, %v607_v4, %v610_v2 }
 0x3d4   :  { %1749 = vtanh.f32 %v613_v11  ;;  %v1698_v17 = vmul.f32 -1.442695, %v613_v11 }
 0x3d6   :  { %1751 = vpow2.f32 %v1698_v17 }
 0x3da   :  { %v1750_v12 = vpop.eup %1749 }
 0x3db   :  { %637 = vrot.lane.b32.xlu0 %v1750_v12, %s1825_s27 }
 0x3dc   :  { %v1752_v25 = vpop.eup %1751 }
 0x3dd   :  { %v618_v30 = vadd.f32 1.0, %v1752_v25 }
 0x3df   :  { %1753 = vrcp.f32 %v618_v30  ;;  %v630_v39 = vand.u32 2147483648, %v618_v30  ;;  %vm624_vm10 = vweird.f32 %v618_v30  ;;  %v628_v40 = vand.u32 2147483647, %v618_v30 }
 0x3e1   :  { %v631_v43 = vor.u32 1.1754944e-38, %v630_v39  ;;  %vm629_vm12 = vcmp.eq.f32.partialorder %v628_v40, 8.507059e+37 }
 0x3e5   :  { %v1754_v32 = vpop.eup %1753 }
 0x3e6   :  { %v620_v33 = vmul.f32 %v1754_v32, %v618_v30  ;;  %vm625_vm9 = vweird.f32 %v1754_v32 }
 0x3e7   :  { %vm626_vm11 = vmor %vm624_vm10, %vm625_vm9 }
 0x3e8   :  { %v621_v35 = vsub.f32 1.0, %v620_v33 }
 0x3ea   :  { %v622_v36 = vmul.f32 %v1754_v32, %v621_v35 }
 0x3ec   :  { %v623_v37 = vadd.f32 %v1754_v32, %v622_v36 }
 0x3ee   :  { %v627_v41 = vsel %vm626_vm11, %v1754_v32, %v623_v37 }
 0x3ef   :  { %v632_v50 = vsel %vm629_vm12, %v631_v43, %v627_v41 }
 0x3f0   :  { %v635_v57 = vmul.f32 %v632_v50, %v614_v55 }
 0x44d   :  { %v638_v45 = vpop.permute.xlu0 %637 }
 0x44e   :  { %v640_v52 = vmul.f32 %v638_v45, %v632_v50 }
 0x450   :  { %642 = vrot.lane.b32.xlu1 %v640_v52, %s1826_s1 }
 0x4c2   :  { %v643_v58 = vpop.permute.xlu1 %642 }
 0x4c3   :  { %v2311_v62 = vadd.f32 %v643_v58, %v635_v57 }
 0x4c5   :  { %1755 = vtanh.f32 %v2311_v62  ;;  %v747_v58 = vsel %vm745_vm13, %v2311_v62, 0.0 }
 0x4cb   :  { %v1756_v63 = vpop.eup %1755 }
 0x4cc   :  { %648 = vrot.lane.b32.xlu2 %v1756_v63, %s1825_s27 }
 0x526   :  { %v649_v8 = vpop.permute.xlu2 %648 }
 0x527   :  { %v651_v9 = vmul.f32 %v649_v8, %v632_v50 }
 0x529   :  { %v682_v13 = vrot.slane %v651_v9, 2  ;;  %653 = vrot.lane.b32.xlu0 %v651_v9, %s1826_s1 }
 0x52b   :  { %683 = vrot.lane.b32.xlu1 %v682_v13, %s1825_s27 }
 0x59b   :  { %v654_v16 = vpop.permute.xlu0 %653 }
 0x59c   :  { %v710_v18 = vsel %vm490_vm7, %v654_v16, 0.0  ;;  %1699 = vmatmul.msk.f32.vlgmr.msrb.gmra.mxu3 %vm490_vm7, %v654_v16 }
 0x59d   :  { %v712_v19 = vrot.slane %v710_v18, 2  ;;  %v684_v20 = vpop.permute.xlu1 %683  ;;  %931 = vmatpush.msrb.mxu3 %v2157_v29 }
 0x59e   :  { %v686_v31 = vsel %vm490_vm7, %v654_v16, %v684_v20 }
 0x59f   :  { %1700 = vmatmul.msk.f32.vlgmr.msra.gmra.mxu0 %vm460_vm2, %v686_v31  ;;  %1701 = vmatmul.msk.f32.vlgmr.msra.gmra.mxu1 %vm460_vm2, %v712_v19 }
 0x5a0   :  { %932 = vmatpush.msrb.mxu3 %v2169_v38  ;;  %1106 = vmatpush.msra.mxu0 %v2318_v0 }
 0x5a1   :  { %1183 = vmatpush.msra.mxu1 %v2157_v29 }
 0x5a2   :  { %933 = vmatpush.msrb.mxu3 %v2181_v47  ;;  %1107 = vmatpush.msra.mxu0 %v2323_v5 }
 0x5a3   :  { %1184 = vmatpush.msra.mxu1 %v2169_v38 }
 0x5a4   :  { %934 = vmatpush.msrb.mxu3 %v2193_v53  ;;  %1108 = vmatpush.msra.mxu0 %v2330_v6 }
 0x5a5   :  { %1185 = vmatpush.msra.mxu1 %v2181_v47 }
 0x5a6   :  { %1109 = vmatpush.msra.mxu0 %v2337_v10 }
 0x5a7   :  { %1186 = vmatpush.msra.mxu1 %v2193_v53 }
 0x5a8   :  { %1110 = vmatpush.msra.mxu0 %v2344_v3 }
 0x5aa   :  { %1111 = vmatpush.msra.mxu0 %v2351_v7 }
 0x5ac   :  { %1112 = vmatpush.msra.mxu0 %v2362_v14 }
 0x5ae   :  { %1113 = vmatpush.msra.mxu0 %v2369_v15 }
 0x61c   :  { %v707_v34 = vpop.f32.mrf.mxu0  ;;  %v732_v48 = vpop.f32.mrf.mxu1 }
 0x61d   :  { %v708_v59 = vadd.f32 %v2302_v54, %v707_v34  ;;  %v733_v61 = vadd.f32 %v2405_v46, %v732_v48 }
 0x61f   :  { %v674_v56 = vpop.f32.mrf.mxu3  ;;  %v739_v2 = vrot.slane %v708_v59, 6  ;;  %v742_v11 = vrot.slane %v733_v61, 4 }
 0x620   :  { %v678_v60 = vrot.slane %v674_v56, 4 }
 0x622   :  { %v680_v1 = vadd.f32 %v678_v60, %v2212_v51 }
 0x624   :  { %v736_v4 = vrot.slane %v680_v1, 4 }
 0x626   :  { %v744_v12 = vsel %vm612_vm8, %v736_v4, %v739_v2 }
 0x627   :  { %v746_v17 = vsel %vm745_vm13, %v744_v12, %v742_v11 }
 0x628   :  { %1757 = vtanh.f32 %v746_v17  ;;  %v1702_v30 = vmul.f32 -1.442695, %v746_v17 }
 0x62a   :  { %1759 = vpow2.f32 %v1702_v30 }
 0x62e   :  { %v1758_v25 = vpop.eup %1757 }
 0x62f   :  { %770 = vrot.lane.b32.xlu2 %v1758_v25, %s1825_s27 }
 0x630   :  { %v1760_v32 = vpop.eup %1759 }
 0x631   :  { %v751_v33 = vadd.f32 1.0, %v1760_v32 }
 0x633   :  { %1761 = vrcp.f32 %v751_v33  ;;  %v763_v41 = vand.u32 2147483648, %v751_v33  ;;  %vm757_vm15 = vweird.f32 %v751_v33  ;;  %v761_v43 = vand.u32 2147483647, %v751_v33 }
 0x635   :  { %v764_v50 = vor.u32 1.1754944e-38, %v763_v41  ;;  %vm762_vm1 = vcmp.eq.f32.partialorder %v761_v43, 8.507059e+37 }
 0x639   :  { %v1762_v35 = vpop.eup %1761 }
 0x63a   :  { %v753_v36 = vmul.f32 %v1762_v35, %v751_v33  ;;  %vm758_vm14 = vweird.f32 %v1762_v35 }
 0x63b   :  { %vm759_vm0 = vmor %vm757_vm15, %vm758_vm14 }
 0x63c   :  { %v754_v37 = vsub.f32 1.0, %v753_v36 }
 0x63e   :  { %v755_v39 = vmul.f32 %v1762_v35, %v754_v37 }
 0x640   :  { %v756_v40 = vadd.f32 %v1762_v35, %v755_v39 }
 0x642   :  { %v760_v45 = vsel %vm759_vm0, %v1762_v35, %v756_v40 }
 0x643   :  { %v765_v55 = vsel %vm762_vm1, %v764_v50, %v760_v45 }
 0x644   :  { %v768_v63 = vmul.f32 %v765_v55, %v747_v58 }
 0x689   :  { %v771_v52 = vpop.permute.xlu2 %770 }
 0x68a   :  { %v773_v57 = vmul.f32 %v771_v52, %v765_v55 }
 0x68c   :  { %775 = vrot.lane.b32.xlu0 %v773_v57, %s1826_s1 }
 0x6fe   :  { %v776_v8 = vpop.permute.xlu0 %775 }
 0x6ff   :  { %v2416_v9 = vadd.f32 %v776_v8, %v768_v63 }
 0x701   :  { %1763 = vtanh.f32 %v2416_v9 }
 0x707   :  { %v1764_v13 = vpop.eup %1763 }
 0x708   :  { %781 = vrot.lane.b32.xlu1 %v1764_v13, %s1825_s27 }
 0x77a   :  { %v782_v16 = vpop.permute.xlu1 %781 }
 0x77b   :  { %v2420_v18 = vmul.f32 %v782_v16, %v765_v55 }
 0x77d   :  { %786 = vrot.lane.b32.xlu2 %v2420_v18, %s1826_s1  ;;  %v815_v19 = vrot.slane %v2420_v18, 2  ;;  %v1595_v8 = vrot.slane %v2420_v18, 4 }
 0x77f   :  { %816 = vrot.lane.b32.xlu0 %v815_v19, %s1825_s27 }
 0x7d7   :  { %v787_v62 = vpop.permute.xlu2 %786 }
 0x7d8   :  { %1703 = vmatmul.msk.f32.vlgmr.msrb.gmra.mxu2 %vm490_vm7, %v787_v62 }
 0x7d9   :  { %1083 = vmatpush.msrb.mxu2 %v2224_v21 }
 0x7db   :  { %1084 = vmatpush.msrb.mxu2 %v2229_v22 }
 0x7dd   :  { %1085 = vmatpush.msrb.mxu2 %v2236_v23 }
 0x7df   :  { %1086 = vmatpush.msrb.mxu2 %v2243_v24 }
 0x7e1   :  { %1087 = vmatpush.msrb.mxu2 %v2250_v26 }
 0x7e3   :  { %1088 = vmatpush.msrb.mxu2 %v2257_v27 }
 0x7e5   :  { %1089 = vmatpush.msrb.mxu2 %v2264_v28 }
 0x7e7   :  { %1090 = vmatpush.msrb.mxu2 %v2274_v42 }
 0x7f1   :  { %v817_v20 = vpop.permute.xlu0 %816 }
 0x7f2   :  { %v819_v31 = vsel %vm490_vm7, %v787_v62, %v817_v20 }
 0x7f3   :  { %v843_v34 = vrot.slane %v819_v31, 2  ;;  %1704 = vmatmul.msk.f32.vlgmr.msra.gmra.mxu3 %vm460_vm2, %v819_v31 }
 0x7f4   :  { %980 = vmatpush.msra.mxu3 %v2318_v0 }
 0x7f5   :  { %1705 = vmatmul.msk.f32.vlgmr.msra.gmra.mxu2 %vm460_vm2, %v843_v34  ;;  %v2498_v34 = vadd.f32 %v2209_v44, %v2297_v49 }
 0x7f6   :  { %981 = vmatpush.msra.mxu3 %v2323_v5  ;;  %1312 = vmatpush.msra.mxu2 %v2157_v29 }
 0x7f8   :  { %982 = vmatpush.msra.mxu3 %v2330_v6  ;;  %1313 = vmatpush.msra.mxu2 %v2169_v38 }
 0x7fa   :  { %983 = vmatpush.msra.mxu3 %v2337_v10  ;;  %1314 = vmatpush.msra.mxu2 %v2181_v47 }
 0x7fc   :  { %984 = vmatpush.msra.mxu3 %v2344_v3  ;;  %1315 = vmatpush.msra.mxu2 %v2193_v53 }
 0x7fe   :  { %985 = vmatpush.msra.mxu3 %v2351_v7 }
 0x800   :  { %986 = vmatpush.msra.mxu3 %v2362_v14 }
 0x802   :  { %987 = vmatpush.msra.mxu3 %v2369_v15 }
 0x85b   :  { %v807_v48 = vpop.f32.mrf.mxu2 }
 0x85c   :  { %v811_v29 = vrot.slane %v807_v48, 2 }
 0x85e   :  { %v813_v56 = vadd.f32 %v811_v29, %v2212_v51 }
 0x860   :  { %v867_v61 = vrot.slane %v813_v56, 6 }
 0x876   :  { %v840_v59 = vpop.f32.mrf.mxu3 }
 0x877   :  { %v841_v38 = vadd.f32 %v2302_v54, %v840_v59 }
 0x878   :  { %v863_v60 = vpop.f32.mrf.mxu2 }
 0x879   :  { %v870_v47 = vrot.slane %v841_v38, 6  ;;  %v864_v1 = vadd.f32 %v2405_v46, %v863_v60 }
 0x87b   :  { %v875_v53 = vsel %vm612_vm8, %v867_v61, %v870_v47  ;;  %v873_v2 = vrot.slane %v864_v1, 4 }
 0x87d   :  { %v876_v4 = vsel %vm745_vm13, %v875_v53, %v873_v2 }
 0x87e   :  { %1765 = vtanh.f32 %v876_v4  ;;  %v1706_v12 = vmul.f32 -1.442695, %v876_v4 }
 0x880   :  { %1767 = vpow2.f32 %v1706_v12 }
 0x884   :  { %v1766_v11 = vpop.eup %1765 }
 0x885   :  { %899 = vrot.lane.b32.xlu1 %v1766_v11, %s1825_s27 }
 0x886   :  { %v1768_v51 = vpop.eup %1767 }
 0x887   :  { %v880_v17 = vadd.f32 1.0, %v1768_v51 }
 0x889   :  { %1769 = vrcp.f32 %v880_v17  ;;  %v892_v36 = vand.u32 2147483648, %v880_v17  ;;  %vm886_vm4 = vweird.f32 %v880_v17  ;;  %v890_v37 = vand.u32 2147483647, %v880_v17 }
 0x88b   :  { %v893_v40 = vor.u32 1.1754944e-38, %v892_v36  ;;  %vm891_vm6 = vcmp.eq.f32.partialorder %v890_v37, 8.507059e+37 }
 0x88f   :  { %v1770_v25 = vpop.eup %1769 }
 0x890   :  { %v882_v30 = vmul.f32 %v1770_v25, %v880_v17  ;;  %vm887_vm3 = vweird.f32 %v1770_v25 }
 0x891   :  { %vm888_vm5 = vmor %vm886_vm4, %vm887_vm3  ;;  %vm1610_vm3 = vcmask 1045504  }
 0x892   :  { %v883_v32 = vsub.f32 1.0, %v882_v30 }
 0x894   :  { %v884_v33 = vmul.f32 %v1770_v25, %v883_v32 }
 0x896   :  { %v885_v35 = vadd.f32 %v1770_v25, %v884_v33 }
 0x898   :  { %v889_v39 = vsel %vm888_vm5, %v1770_v25, %v885_v35 }
 0x899   :  { %v894_v43 = vsel %vm891_vm6, %v893_v40, %v889_v39 }
 0x89a   :  { %v897_v50 = vmul.f32 %v894_v43, %v2416_v9 }
 0x8f7   :  { %v900_v41 = vpop.permute.xlu1 %899 }
 0x8f8   :  { %v902_v45 = vmul.f32 %v900_v41, %v894_v43 }
 0x8fa   :  { %904 = vrot.lane.b32.xlu2 %v902_v45, %s1826_s1 }
 0x954   :  { %v905_v52 = vpop.permute.xlu2 %904 }
 0x955   :  { %v2458_v55 = vadd.f32 %v905_v52, %v897_v50 }
 0x957   :  { %1771 = vtanh.f32 %v2458_v55 }
 0x95d   :  { %v1772_v57 = vpop.eup %1771 }
 0x95e   :  { %910 = vrot.lane.b32.xlu0 %v1772_v57, %s1825_s27 }
 0x9d0   :  { %v911_v58 = vpop.permute.xlu0 %910 }
 0x9d1   :  { %v913_v63 = vmul.f32 %v911_v58, %v894_v43 }
 0x9d3   :  { %v941_v13 = vrot.slane %v913_v63, 2  ;;  %915 = vrot.lane.b32.xlu1 %v913_v63, %s1826_s1 }
 0x9d5   :  { %942 = vrot.lane.b32.xlu2 %v941_v13, %s1825_s27  ;;  %v2466_v16 = vsel %vm612_vm8, %v1595_v8, %v941_v13 }
 0xa2f   :  { %v943_v9 = vpop.permute.xlu2 %942 }
 0xa45   :  { %v916_v19 = vpop.permute.xlu1 %915 }
 0xa46   :  { %v945_v62 = vsel %vm490_vm7, %v916_v19, %v943_v9  ;;  %1707 = vmatmul.msk.f32.vlgmr.msrb.gmra.mxu3 %vm490_vm7, %v916_v19 }
 0xa47   :  { %1708 = vmatmul.msk.f32.vlgmr.msrb.gmra.mxu1 %vm460_vm2, %v945_v62  ;;  %1212 = vmatpush.msrb.mxu3 %v2224_v21  ;;  %v969_v18 = vrot.slane %v945_v62, 2 }
 0xa48   :  { %1235 = vmatpush.msrb.mxu1 %v2318_v0 }
 0xa49   :  { %1213 = vmatpush.msrb.mxu3 %v2229_v22 }
 0xa4a   :  { %1236 = vmatpush.msrb.mxu1 %v2323_v5 }
 0xa4b   :  { %1214 = vmatpush.msrb.mxu3 %v2236_v23 }
 0xa4c   :  { %1237 = vmatpush.msrb.mxu1 %v2330_v6 }
 0xa4d   :  { %1215 = vmatpush.msrb.mxu3 %v2243_v24 }
 0xa4e   :  { %1709 = vmatmul.msk.f32.vlgmr.msra.gmra.mxu3 %vm460_vm2, %v969_v18  ;;  %1238 = vmatpush.msrb.mxu1 %v2337_v10 }
 0xa4f   :  { %1216 = vmatpush.msrb.mxu3 %v2250_v26 }
 0xa50   :  { %1239 = vmatpush.msrb.mxu1 %v2344_v3 }
 0xa51   :  { %1217 = vmatpush.msrb.mxu3 %v2257_v27 }
 0xa52   :  { %1240 = vmatpush.msrb.mxu1 %v2351_v7 }
 0xa53   :  { %1218 = vmatpush.msrb.mxu3 %v2264_v28 }
 0xa54   :  { %1241 = vmatpush.msrb.mxu1 %v2362_v14 }
 0xa55   :  { %1219 = vmatpush.msrb.mxu3 %v2274_v42 }
 0xa56   :  { %1242 = vmatpush.msrb.mxu1 %v2369_v15 }
 0xa57   :  { %1444 = vmatpush.msra.mxu3 %v2224_v21 }
 0xa59   :  { %1445 = vmatpush.msra.mxu3 %v2229_v22 }
 0xa5b   :  { %1446 = vmatpush.msra.mxu3 %v2236_v23 }
 0xa5d   :  { %1447 = vmatpush.msra.mxu3 %v2243_v24 }
 0xa5f   :  { %1448 = vmatpush.msra.mxu3 %v2250_v26 }
 0xa61   :  { %1449 = vmatpush.msra.mxu3 %v2257_v27 }
 0xa63   :  { %1450 = vmatpush.msra.mxu3 %v2264_v28 }
 0xa65   :  { %1451 = vmatpush.msra.mxu3 %v2274_v42 }
 0xac4   :  { %v966_v31 = vpop.f32.mrf.mxu1 }
 0xac5   :  { %v967_v48 = vadd.f32 %v2302_v54, %v966_v31 }
 0xac7   :  { %v993_v38 = vrot.slane %v967_v48, 6 }
 0xac9   :  { %v936_v20 = vpop.f32.mrf.mxu3 }
 0xaca   :  { %v939_v29 = vadd.f32 %v936_v20, %v2498_v34 }
 0xacc   :  { %v998_v61 = vsel %vm612_vm8, %v939_v29, %v993_v38 }
 0xad1   :  { %v989_v56 = vpop.f32.mrf.mxu3 }
 0xad2   :  { %v990_v59 = vadd.f32 %v2405_v46, %v989_v56 }
 0xad4   :  { %v996_v60 = vrot.slane %v990_v59, 4 }
 0xad6   :  { %v999_v47 = vsel %vm745_vm13, %v998_v61, %v996_v60 }
 0xad7   :  { %1773 = vtanh.f32 %v999_v47  ;;  %v1710_v53 = vmul.f32 -1.442695, %v999_v47 }
 0xad9   :  { %1775 = vpow2.f32 %v1710_v53 }
 0xadd   :  { %v1774_v1 = vpop.eup %1773 }
 0xade   :  { %1022 = vrot.lane.b32.xlu0 %v1774_v1, %s1825_s27 }
 0xadf   :  { %v1776_v44 = vpop.eup %1775 }
 0xae0   :  { %v1003_v49 = vadd.f32 1.0, %v1776_v44 }
 0xae2   :  { %1777 = vrcp.f32 %v1003_v49  ;;  %v1015_v17 = vand.u32 2147483648, %v1003_v49  ;;  %vm1009_vm10 = vweird.f32 %v1003_v49  ;;  %v1013_v25 = vand.u32 2147483647, %v1003_v49 }
 0xae4   :  { %v1016_v32 = vor.u32 1.1754944e-38, %v1015_v17  ;;  %vm1014_vm12 = vcmp.eq.f32.partialorder %v1013_v25, 8.507059e+37 }
 0xae8   :  { %v1778_v2 = vpop.eup %1777 }
 0xae9   :  { %v1005_v4 = vmul.f32 %v1778_v2, %v1003_v49  ;;  %vm1010_vm9 = vweird.f32 %v1778_v2 }
 0xaea   :  { %vm1011_vm11 = vmor %vm1009_vm10, %vm1010_vm9 }
 0xaeb   :  { %v1006_v11 = vsub.f32 1.0, %v1005_v4 }
 0xaed   :  { %v1007_v12 = vmul.f32 %v1778_v2, %v1006_v11 }
 0xaef   :  { %v1008_v51 = vadd.f32 %v1778_v2, %v1007_v12 }
 0xaf1   :  { %v1012_v30 = vsel %vm1011_vm11, %v1778_v2, %v1008_v51 }
 0xaf2   :  { %v1017_v35 = vsel %vm1014_vm12, %v1016_v32, %v1012_v30 }
 0xaf3   :  { %v1020_v37 = vmul.f32 %v1017_v35, %v2458_v55 }
 0xb50   :  { %v1023_v33 = vpop.permute.xlu0 %1022 }
 0xb51   :  { %v1025_v36 = vmul.f32 %v1023_v33, %v1017_v35 }
 0xb53   :  { %1027 = vrot.lane.b32.xlu1 %v1025_v36, %s1826_s1 }
 0xbc5   :  { %v1028_v39 = vpop.permute.xlu1 %1027 }
 0xbc6   :  { %v2508_v40 = vadd.f32 %v1028_v39, %v1020_v37 }
 0xbc8   :  { %1779 = vtanh.f32 %v2508_v40 }
 0xbce   :  { %v1780_v41 = vpop.eup %1779 }
 0xbcf   :  { %1033 = vrot.lane.b32.xlu2 %v1780_v41, %s1825_s27 }
 0xc29   :  { %v1034_v43 = vpop.permute.xlu2 %1033 }
 0xc2a   :  { %v1036_v45 = vmul.f32 %v1034_v43, %v1017_v35 }
 0xc2c   :  { %1038 = vrot.lane.b32.xlu0 %v1036_v45, %s1826_s1  ;;  %v1067_v50 = vrot.slane %v1036_v45, 2  ;;  %v2515_v52 = vsel %vm745_vm13, %v2466_v16, %v1036_v45 }
 0xc2e   :  { %1068 = vrot.lane.b32.xlu1 %v1067_v50, %s1825_s27 }
 0xc9e   :  { %v1039_v55 = vpop.permute.xlu0 %1038 }
 0xc9f   :  { %1711 = vmatmul.msk.f32.vlgmr.msrb.gmra.mxu0 %vm490_vm7, %v1039_v55 }
 0xca0   :  { %v1069_v57 = vpop.permute.xlu1 %1068  ;;  %1341 = vmatpush.msrb.mxu0 %v2224_v21 }
 0xca1   :  { %v1071_v58 = vsel %vm490_vm7, %v1039_v55, %v1069_v57 }
 0xca2   :  { %1712 = vmatmul.msk.f32.vlgmr.msrb.gmra.mxu2 %vm460_vm2, %v1071_v58  ;;  %1342 = vmatpush.msrb.mxu0 %v2229_v22  ;;  %v1095_v63 = vrot.slane %v1071_v58, 2 }
 0xca3   :  { %1364 = vmatpush.msrb.mxu2 %v2318_v0 }
 0xca4   :  { %1343 = vmatpush.msrb.mxu0 %v2236_v23 }
 0xca5   :  { %1365 = vmatpush.msrb.mxu2 %v2323_v5 }
 0xca6   :  { %1344 = vmatpush.msrb.mxu0 %v2243_v24 }
 0xca7   :  { %1713 = vmatmul.msk.f32.vlgmr.msra.gmra.mxu0 %vm460_vm2, %v1095_v63  ;;  %1366 = vmatpush.msrb.mxu2 %v2330_v6 }
 0xca8   :  { %1345 = vmatpush.msrb.mxu0 %v2250_v26 }
 0xca9   :  { %1367 = vmatpush.msrb.mxu2 %v2337_v10 }
 0xcaa   :  { %1346 = vmatpush.msrb.mxu0 %v2257_v27 }
 0xcab   :  { %1368 = vmatpush.msrb.mxu2 %v2344_v3 }
 0xcac   :  { %1347 = vmatpush.msrb.mxu0 %v2264_v28 }
 0xcad   :  { %1369 = vmatpush.msrb.mxu2 %v2351_v7 }
 0xcae   :  { %1348 = vmatpush.msrb.mxu0 %v2274_v42 }
 0xcaf   :  { %1370 = vmatpush.msrb.mxu2 %v2362_v14 }
 0xcb0   :  { %1543 = vmatpush.msra.mxu0 %v2318_v0 }
 0xcb1   :  { %1371 = vmatpush.msrb.mxu2 %v2369_v15 }
 0xcb2   :  { %1544 = vmatpush.msra.mxu0 %v2323_v5 }
 0xcb4   :  { %1545 = vmatpush.msra.mxu0 %v2330_v6 }
 0xcb6   :  { %1546 = vmatpush.msra.mxu0 %v2337_v10 }
 0xcb8   :  { %1547 = vmatpush.msra.mxu0 %v2344_v3 }
 0xcba   :  { %1548 = vmatpush.msra.mxu0 %v2351_v7 }
 0xcbc   :  { %1549 = vmatpush.msra.mxu0 %v2362_v14 }
 0xcbe   :  { %1550 = vmatpush.msra.mxu0 %v2369_v15 }
 0xd1c   :  { %v1059_v21 = vpop.f32.mrf.mxu0 }
 0xd1d   :  { %v1063_v22 = vrot.slane %v1059_v21, 6 }
 0xd1f   :  { %v1065_v23 = vadd.f32 %v1063_v22, %v2498_v34 }
 0xd21   :  { %v1119_v42 = vrot.slane %v1065_v23, 2 }
 0xd24   :  { %v1115_v24 = vpop.f32.mrf.mxu0 }
 0xd25   :  { %v1116_v26 = vadd.f32 %v2405_v46, %v1115_v24  ;;  %v1092_v27 = vpop.f32.mrf.mxu2 }
 0xd26   :  { %v1093_v28 = vadd.f32 %v2302_v54, %v1092_v27 }
 0xd27   :  { %v1125_v13 = vrot.slane %v1116_v26, 4 }
 0xd28   :  { %v1122_v8 = vrot.slane %v1093_v28, 6 }
 0xd2a   :  { %v1127_v16 = vsel %vm612_vm8, %v1119_v42, %v1122_v8 }
 0xd2b   :  { %v1128_v9 = vsel %vm745_vm13, %v1127_v16, %v1125_v13 }
 0xd2c   :  { %1781 = vtanh.f32 %v1128_v9  ;;  %v1714_v62 = vmul.f32 -1.442695, %v1128_v9 }
 0xd2e   :  { %1783 = vpow2.f32 %v1714_v62 }
 0xd32   :  { %v1782_v19 = vpop.eup %1781 }
 0xd33   :  { %1151 = vrot.lane.b32.xlu2 %v1782_v19, %s1825_s27 }
 0xd34   :  { %v1784_v18 = vpop.eup %1783 }
 0xd35   :  { %v1132_v20 = vadd.f32 1.0, %v1784_v18 }
 0xd37   :  { %1785 = vrcp.f32 %v1132_v20  ;;  %v1144_v38 = vand.u32 2147483648, %v1132_v20  ;;  %vm1138_vm15 = vweird.f32 %v1132_v20  ;;  %v1142_v60 = vand.u32 2147483647, %v1132_v20 }
 0xd39   :  { %v1145_v47 = vor.u32 1.1754944e-38, %v1144_v38  ;;  %vm1143_vm1 = vcmp.eq.f32.partialorder %v1142_v60, 8.507059e+37 }
 0xd3d   :  { %v1786_v31 = vpop.eup %1785 }
 0xd3e   :  { %v1134_v48 = vmul.f32 %v1786_v31, %v1132_v20  ;;  %vm1139_vm14 = vweird.f32 %v1786_v31 }
 0xd3f   :  { %vm1140_vm0 = vmor %vm1138_vm15, %vm1139_vm14 }
 0xd40   :  { %v1135_v29 = vsub.f32 1.0, %v1134_v48 }
 0xd42   :  { %v1136_v56 = vmul.f32 %v1786_v31, %v1135_v29 }
 0xd44   :  { %v1137_v59 = vadd.f32 %v1786_v31, %v1136_v56 }
 0xd46   :  { %v1141_v61 = vsel %vm1140_vm0, %v1786_v31, %v1137_v59 }
 0xd47   :  { %v1146_v53 = vsel %vm1143_vm1, %v1145_v47, %v1141_v61 }
 0xd48   :  { %v1149_v49 = vmul.f32 %v1146_v53, %v2508_v40 }
 0xd8d   :  { %v1152_v1 = vpop.permute.xlu2 %1151 }
 0xd8e   :  { %v1154_v44 = vmul.f32 %v1152_v1, %v1146_v53 }
 0xd90   :  { %1156 = vrot.lane.b32.xlu0 %v1154_v44, %s1826_s1 }
 0xe02   :  { %v1157_v2 = vpop.permute.xlu0 %1156 }
 0xe03   :  { %v2554_v4 = vadd.f32 %v1157_v2, %v1149_v49 }
 0xe05   :  { %1787 = vtanh.f32 %v2554_v4 }
 0xe0b   :  { %v1788_v11 = vpop.eup %1787 }
 0xe0c   :  { %1162 = vrot.lane.b32.xlu1 %v1788_v11, %s1825_s27 }
 0xe7e   :  { %v1163_v12 = vpop.permute.xlu1 %1162 }
 0xe7f   :  { %v1165_v51 = vmul.f32 %v1163_v12, %v1146_v53 }
 0xe81   :  { %v1598_v17 = vrot.slane %v1165_v51, 6  ;;  %1167 = vrot.lane.b32.xlu2 %v1165_v51, %s1826_s1  ;;  %v1196_v25 = vrot.slane %v1165_v51, 2 }
 0xe83   :  { %1197 = vrot.lane.b32.xlu0 %v1196_v25, %s1825_s27  ;;  %v2562_v30 = vsel %vm1610_vm3, %v2515_v52, %v1598_v17 }
 0xedb   :  { %v1168_v32 = vpop.permute.xlu2 %1167 }
 0xedc   :  { %1715 = vmatmul.msk.f32.vlgmr.msra.gmra.mxu1 %vm490_vm7, %v1168_v32 }
 0xedd   :  { %1467 = vmatpush.msra.mxu1 %v2318_v0 }
 0xedf   :  { %1468 = vmatpush.msra.mxu1 %v2323_v5 }
 0xee1   :  { %1469 = vmatpush.msra.mxu1 %v2330_v6 }
 0xee3   :  { %1470 = vmatpush.msra.mxu1 %v2337_v10 }
 0xee5   :  { %1471 = vmatpush.msra.mxu1 %v2344_v3 }
 0xee7   :  { %1472 = vmatpush.msra.mxu1 %v2351_v7 }
 0xee9   :  { %1473 = vmatpush.msra.mxu1 %v2362_v14 }
 0xeeb   :  { %1474 = vmatpush.msra.mxu1 %v2369_v15 }
 0xef5   :  { %v1198_v33 = vpop.permute.xlu0 %1197 }
 0xef6   :  { %v1200_v35 = vsel %vm490_vm7, %v1168_v32, %v1198_v33 }
 0xef7   :  { %v1224_v36 = vrot.slane %v1200_v35, 2  ;;  %1716 = vmatmul.msk.f32.vlgmr.msrb.gmra.mxu3 %vm460_vm2, %v1200_v35 }
 0xef9   :  { %1717 = vmatmul.msk.f32.vlgmr.msrb.gmra.mxu1 %vm460_vm2, %v1224_v36 }
 0xf59   :  { %v1188_v0 = vpop.f32.mrf.mxu1 }
 0xf5a   :  { %v1192_v5 = vrot.slane %v1188_v0, 4 }
 0xf5c   :  { %v1194_v10 = vadd.f32 %v1192_v5, %v2498_v34 }
 0xf5e   :  { %v1248_v37 = vrot.slane %v1194_v10, 4 }
 0xf76   :  { %v1244_v6 = vpop.f32.mrf.mxu1 }
 0xf77   :  { %v1245_v3 = vadd.f32 %v2405_v46, %v1244_v6 }
 0xf79   :  { %v1254_v39 = vrot.slane %v1245_v3, 4 }
 0xf7a   :  { %v1221_v7 = vpop.f32.mrf.mxu3 }
 0xf7b   :  { %v1222_v14 = vadd.f32 %v2302_v54, %v1221_v7 }
 0xf7d   :  { %v1251_v15 = vrot.slane %v1222_v14, 6 }
 0xf7f   :  { %v1256_v40 = vsel %vm612_vm8, %v1248_v37, %v1251_v15 }
 0xf80   :  { %v1257_v41 = vsel %vm745_vm13, %v1256_v40, %v1254_v39 }
 0xf81   :  { %1789 = vtanh.f32 %v1257_v41  ;;  %v1718_v45 = vmul.f32 -1.442695, %v1257_v41 }
 0xf83   :  { %1791 = vpow2.f32 %v1718_v45 }
 0xf87   :  { %v1790_v43 = vpop.eup %1789 }
 0xf88   :  { %1280 = vrot.lane.b32.xlu1 %v1790_v43, %s1825_s27 }
 0xf89   :  { %v1792_v50 = vpop.eup %1791 }
 0xf8a   :  { %v1261_v52 = vadd.f32 1.0, %v1792_v50 }
 0xf8c   :  { %1793 = vrcp.f32 %v1261_v52  ;;  %v1273_v22 = vand.u32 2147483648, %v1261_v52  ;;  %vm1267_vm5 = vweird.f32 %v1261_v52  ;;  %v1271_v23 = vand.u32 2147483647, %v1261_v52 }
 0xf8e   :  { %v1274_v26 = vor.u32 1.1754944e-38, %v1273_v22  ;;  %vm1272_vm9 = vcmp.eq.f32.partialorder %v1271_v23, 8.507059e+37  ;;  %v1821_v23 = vld [vmem:[%s2686_s2 + $0xe8] ss:$0 sm:$0xff] }
 0xf92   :  { %v1794_v55 = vpop.eup %1793 }
 0xf93   :  { %v1263_v57 = vmul.f32 %v1794_v55, %v1261_v52  ;;  %vm1268_vm4 = vweird.f32 %v1794_v55 }
 0xf94   :  { %vm1269_vm6 = vmor %vm1267_vm5, %vm1268_vm4 }
 0xf95   :  { %v1264_v58 = vsub.f32 1.0, %v1263_v57 }
 0xf97   :  { %v1265_v63 = vmul.f32 %v1794_v55, %v1264_v58 }
 0xf99   :  { %v1266_v21 = vadd.f32 %v1794_v55, %v1265_v63 }
 0xf9b   :  { %v1270_v24 = vsel %vm1269_vm6, %v1794_v55, %v1266_v21 }
 0xf9c   :  { %v1275_v28 = vsel %vm1272_vm9, %v1274_v26, %v1270_v24 }
 0xf9d   :  { %v1278_v8 = vmul.f32 %v1275_v28, %v2554_v4 }
 0xffa   :  { %v1281_v27 = vpop.permute.xlu1 %1280 }
 0xffb   :  { %v1283_v42 = vmul.f32 %v1281_v27, %v1275_v28 }
 0xffd   :  { %1285 = vrot.lane.b32.xlu2 %v1283_v42, %s1826_s1 }
0x1057   :  { %v1286_v13 = vpop.permute.xlu2 %1285 }
0x1058   :  { %v1288_v16 = vadd.f32 %v1286_v13, %v1278_v8 }
0x105a   :  { %1795 = vtanh.f32 %v1288_v16 }
0x1060   :  { %v1796_v9 = vpop.eup %1795 }
0x1061   :  { %1291 = vrot.lane.b32.xlu0 %v1796_v9, %s1825_s27 }
0x10d3   :  { %v1292_v19 = vpop.permute.xlu0 %1291 }
0x10d4   :  { %v1294_v62 = vmul.f32 %v1292_v19, %v1275_v28 }
0x10d6   :  { %1296 = vrot.lane.b32.xlu1 %v1294_v62, %s1826_s1  ;;  %v1325_v18 = vrot.slane %v1294_v62, 2  ;;  %v1600_v41 = vrot.slane %v1294_v62, 4 }
0x10d8   :  { %1326 = vrot.lane.b32.xlu2 %v1325_v18, %s1825_s27 }
0x1132   :  { %v1327_v20 = vpop.permute.xlu2 %1326 }
0x1148   :  { %v1297_v31 = vpop.permute.xlu1 %1296 }
0x1149   :  { %v1329_v48 = vsel %vm490_vm7, %v1297_v31, %v1327_v20  ;;  %1719 = vmatmul.msk.f32.vlgmr.msra.gmra.mxu2 %vm490_vm7, %v1297_v31 }
0x114a   :  { %1720 = vmatmul.msk.f32.vlgmr.msrb.gmra.mxu0 %vm460_vm2, %v1329_v48  ;;  %v1353_v29 = vrot.slane %v1329_v48, 2 }
0x1151   :  { %1721 = vmatmul.msk.f32.vlgmr.msrb.gmra.mxu2 %vm460_vm2, %v1353_v29 }
0x11c7   :  { %v1350_v38 = vpop.f32.mrf.mxu0 }
0x11c8   :  { %v1351_v61 = vadd.f32 %v2302_v54, %v1350_v38 }
0x11ca   :  { %v1380_v44 = vrot.slane %v1351_v61, 6 }
0x11cc   :  { %v1317_v56 = vpop.f32.mrf.mxu2 }
0x11cd   :  { %v1321_v59 = vrot.slane %v1317_v56, 2 }
0x11cf   :  { %v1323_v60 = vadd.f32 %v1321_v59, %v2498_v34 }
0x11d1   :  { %v1377_v47 = vrot.slane %v1323_v60, 6 }
0x11d3   :  { %v1385_v2 = vsel %vm612_vm8, %v1377_v47, %v1380_v44 }
0x11d4   :  { %v1373_v1 = vpop.f32.mrf.mxu2 }
0x11d5   :  { %v1374_v53 = vadd.f32 %v2405_v46, %v1373_v1 }
0x11d7   :  { %v1383_v49 = vrot.slane %v1374_v53, 4 }
0x11d9   :  { %v1386_v4 = vsel %vm745_vm13, %v1385_v2, %v1383_v49 }
0x11da   :  { %1797 = vtanh.f32 %v1386_v4  ;;  %v1722_v12 = vmul.f32 -1.442695, %v1386_v4 }
0x11dc   :  { %1799 = vpow2.f32 %v1722_v12 }
0x11e0   :  { %v1798_v11 = vpop.eup %1797 }
0x11e1   :  { %1409 = vrot.lane.b32.xlu0 %v1798_v11, %s1825_s27 }
0x11e2   :  { %v1800_v51 = vpop.eup %1799 }
0x11e3   :  { %v1390_v34 = vadd.f32 1.0, %v1800_v51 }
0x11e5   :  { %1801 = vrcp.f32 %v1390_v34  ;;  %v1402_v35 = vand.u32 2147483648, %v1390_v34  ;;  %vm1396_vm11 = vweird.f32 %v1390_v34  ;;  %v1400_v36 = vand.u32 2147483647, %v1390_v34 }
0x11e7   :  { %v1403_v5 = vor.u32 1.1754944e-38, %v1402_v35  ;;  %vm1401_vm14 = vcmp.eq.f32.partialorder %v1400_v36, 8.507059e+37  ;;  %v53_v35 = vld [vmem:[%s2686_s2 + $0x110] sm:$0xff]  ;;  %v51_v36 = vld [vmem:[%s2686_s2 + $0x100] sm:$0xff] }
0x11e8   :  { %1638 = vmatpush.msra.mxu2 %v53_v35 }
0x11eb   :  { %v1802_v54 = vpop.eup %1801 }
0x11ec   :  { %v1392_v17 = vmul.f32 %v1802_v54, %v1390_v34  ;;  %vm1397_vm10 = vweird.f32 %v1802_v54 }
0x11ed   :  { %vm1398_vm12 = vmor %vm1396_vm11, %vm1397_vm10  ;;  %vm1659_vm10 = vcmask 259072  }
0x11ee   :  { %v1393_v25 = vsub.f32 1.0, %v1392_v17 }
0x11f0   :  { %v1394_v32 = vmul.f32 %v1802_v54, %v1393_v25 }
0x11f2   :  { %v1395_v33 = vadd.f32 %v1802_v54, %v1394_v32 }
0x11f4   :  { %v1399_v0 = vsel %vm1398_vm12, %v1802_v54, %v1395_v33 }
0x11f5   :  { %v1404_v10 = vsel %vm1401_vm14, %v1403_v5, %v1399_v0 }
0x11f6   :  { %v1407_v7 = vmul.f32 %v1404_v10, %v1288_v16 }
0x1253   :  { %v1410_v6 = vpop.permute.xlu0 %1409 }
0x1254   :  { %v1412_v3 = vmul.f32 %v1410_v6, %v1404_v10 }
0x1256   :  { %1414 = vrot.lane.b32.xlu1 %v1412_v3, %s1826_s1 }
0x12c8   :  { %v1415_v14 = vpop.permute.xlu1 %1414 }
0x12c9   :  { %v2598_v37 = vadd.f32 %v1415_v14, %v1407_v7 }
0x12cb   :  { %1803 = vtanh.f32 %v2598_v37  ;;  %v1484_v38 = vrot.slane %v2598_v37, 2 }
0x12d1   :  { %v1804_v15 = vpop.eup %1803 }
0x12d2   :  { %1420 = vrot.lane.b32.xlu2 %v1804_v15, %s1825_s27 }
0x132c   :  { %v1421_v39 = vpop.permute.xlu2 %1420 }
0x132d   :  { %v2602_v40 = vmul.f32 %v1421_v39, %v1404_v10 }
0x132f   :  { %1425 = vrot.lane.b32.xlu0 %v2602_v40, %s1826_s1  ;;  %v1428_v43 = vrot.slane %v2602_v40, 2 }
0x1331   :  { %1429 = vrot.lane.b32.xlu1 %v1428_v43, %s1825_s27  ;;  %v1612_v45 = vsel %vm612_vm8, %v1600_v41, %v1428_v43 }
0x13a1   :  { %v1426_v50 = vpop.permute.xlu0 %1425 }
0x13a3   :  { %v1430_v52 = vpop.permute.xlu1 %1429 }
0x13a4   :  { %v1432_v55 = vsel %vm490_vm7, %v1426_v50, %v1430_v52 }
0x13a5   :  { %v1456_v57 = vrot.slane %v1432_v55, 2  ;;  %1723 = vmatmul.msk.f32.vlgmr.msra.gmra.mxu3 %vm460_vm2, %v1432_v55 }
0x13a7   :  { %1724 = vmatmul.msk.f32.vlgmr.msra.gmra.mxu1 %vm460_vm2, %v1456_v57 }
0x1424   :  { %v1476_v58 = vpop.f32.mrf.mxu1 }
0x1425   :  { %v1477_v63 = vadd.f32 %v2405_v46, %v1476_v58 }
0x1427   :  { %v1480_v22 = vrot.slane %v1477_v63, 6 }
0x1428   :  { %v1453_v21 = vpop.f32.mrf.mxu3 }
0x1429   :  { %v1454_v24 = vadd.f32 %v1821_v23, %v1453_v21 }
0x142b   :  { %v1482_v26 = vsel %vm612_vm8, %v1454_v24, %v1480_v22 }
0x142c   :  { %1805 = vtanh.f32 %v1482_v26  ;;  %v1725_v28 = vmul.f32 -1.442695, %v1482_v26  ;;  %v1740_v26 = vld [vmem:[%s2686_s2 + $0x118] ss:$0 sm:$0xff] }
0x142e   :  { %1807 = vpow2.f32 %v1725_v28 }
0x1432   :  { %v1806_v27 = vpop.eup %1805 }
0x1433   :  { %1508 = vrot.lane.b32.xlu2 %v1806_v27, %s1825_s27 }
0x1434   :  { %v1808_v42 = vpop.eup %1807 }
0x1435   :  { %v1489_v8 = vadd.f32 1.0, %v1808_v42 }
0x1437   :  { %1809 = vrcp.f32 %v1489_v8  ;;  %v1501_v18 = vand.u32 2147483648, %v1489_v8  ;;  %vm1495_vm0 = vweird.f32 %v1489_v8  ;;  %v1499_v20 = vand.u32 2147483647, %v1489_v8 }
0x1439   :  { %v1502_v48 = vor.u32 1.1754944e-38, %v1501_v18  ;;  %vm1500_vm4 = vcmp.eq.f32.partialorder %v1499_v20, 8.507059e+37 }
0x143d   :  { %v1810_v13 = vpop.eup %1809 }
0x143e   :  { %v1491_v16 = vmul.f32 %v1810_v13, %v1489_v8  ;;  %vm1496_vm15 = vweird.f32 %v1810_v13 }
0x143f   :  { %vm1497_vm1 = vmor %vm1495_vm0, %vm1496_vm15 }
0x1440   :  { %v1492_v9 = vsub.f32 1.0, %v1491_v16 }
0x1442   :  { %v1493_v19 = vmul.f32 %v1810_v13, %v1492_v9 }
0x1444   :  { %v1494_v62 = vadd.f32 %v1810_v13, %v1493_v19 }
0x1446   :  { %v1498_v31 = vsel %vm1497_vm1, %v1810_v13, %v1494_v62 }
0x1447   :  { %v1503_v56 = vsel %vm1500_vm4, %v1502_v48, %v1498_v31 }
0x1448   :  { %v1506_v60 = vmul.f32 %v1503_v56, %v1484_v38 }
0x148d   :  { %v1509_v29 = vpop.permute.xlu2 %1508 }
0x148e   :  { %v1511_v59 = vmul.f32 %v1509_v29, %v1503_v56 }
0x1490   :  { %1513 = vrot.lane.b32.xlu0 %v1511_v59, %s1826_s1 }
0x1502   :  { %v1514_v61 = vpop.permute.xlu0 %1513 }
0x1503   :  { %v1516_v47 = vadd.f32 %v1514_v61, %v1506_v60 }
0x1505   :  { %1811 = vtanh.f32 %v1516_v47  ;;  %v1576_v52 = vrot.slane %v1516_v47, 2  ;;  %v1661_v57 = vrot.slane %v1516_v47, 6 }
0x1507   :  { %v1666_v22 = vsel %vm612_vm8, %v2598_v37, %v1661_v57 }
0x150b   :  { %v1812_v1 = vpop.eup %1811 }
0x150c   :  { %1519 = vrot.lane.b32.xlu1 %v1812_v1, %s1825_s27 }
0x157e   :  { %v1520_v53 = vpop.permute.xlu1 %1519 }
0x157f   :  { %v2621_v44 = vmul.f32 %v1520_v53, %v1503_v56 }
0x1581   :  { %v1603_v49 = vrot.slane %v2621_v44, 6  ;;  %1524 = vrot.lane.b32.xlu2 %v2621_v44, %s1826_s1  ;;  %v1527_v2 = vrot.slane %v2621_v44, 2 }
0x1583   :  { %1528 = vrot.lane.b32.xlu0 %v1527_v2, %s1825_s27  ;;  %v2631_v4 = vsel %vm745_vm13, %v1612_v45, %v1603_v49  ;;  %v1653_v9 = vsel %vm612_vm8, %v2602_v40, %v1603_v49 }
0x15db   :  { %v1525_v11 = vpop.permute.xlu2 %1524 }
0x15f5   :  { %v1529_v12 = vpop.permute.xlu0 %1528 }
0x15f6   :  { %v1531_v51 = vsel %vm490_vm7, %v1525_v11, %v1529_v12 }
0x15f7   :  { %1726 = vmatmul.msk.f32.vlgmr.msra.gmra.mxu0 %vm460_vm2, %v1531_v51 }
0x1674   :  { %v1552_v34 = vpop.f32.mrf.mxu0 }
0x1675   :  { %v1553_v54 = vadd.f32 %v2405_v46, %v1552_v34  ;;  %v52_v46 = vld [vmem:[%s2686_s2 + $0x108] sm:$0xff] }
0x1676   :  { %1639 = vmatpush.msra.mxu2 %v52_v46 }
0x1677   :  { %1813 = vtanh.f32 %v1553_v54  ;;  %v1727_v25 = vmul.f32 -1.442695, %v1553_v54 }
0x1678   :  { %1640 = vmatpush.msra.mxu2 %v51_v36 }
0x1679   :  { %1815 = vpow2.f32 %v1727_v25 }
0x167d   :  { %v1814_v17 = vpop.eup %1813 }
0x167e   :  { %1580 = vrot.lane.b32.xlu1 %v1814_v17, %s1825_s27 }
0x167f   :  { %v1816_v32 = vpop.eup %1815 }
0x1680   :  { %v1558_v33 = vadd.f32 1.0, %v1816_v32 }
0x1682   :  { %1817 = vrcp.f32 %v1558_v33  ;;  %v1570_v7 = vand.u32 2147483648, %v1558_v33  ;;  %vm1564_vm5 = vweird.f32 %v1558_v33  ;;  %v1568_v14 = vand.u32 2147483647, %v1558_v33 }
0x1684   :  { %v1571_v39 = vor.u32 1.1754944e-38, %v1570_v7  ;;  %vm1569_vm9 = vcmp.eq.f32.partialorder %v1568_v14, 8.507059e+37 }
0x1686   :  { %1618 = vrot.lane.b32.xlu1 %v2562_v30, %s1826_s1  ;;  %v50_v30 = vld [vmem:[%s2686_s2 + $0xf8] sm:$0xff] }
0x1687   :  { %1641 = vmatpush.msra.mxu2 %v50_v30 }
0x1688   :  { %v1818_v0 = vpop.eup %1817 }
0x1689   :  { %v1560_v5 = vmul.f32 %v1818_v0, %v1558_v33  ;;  %vm1565_vm2 = vweird.f32 %v1818_v0 }
0x168a   :  { %vm1566_vm6 = vmor %vm1564_vm5, %vm1565_vm2 }
0x168b   :  { %v1561_v6 = vsub.f32 1.0, %v1560_v5 }
0x168d   :  { %v1562_v10 = vmul.f32 %v1818_v0, %v1561_v6 }
0x168f   :  { %v1563_v3 = vadd.f32 %v1818_v0, %v1562_v10 }
0x1691   :  { %v1567_v15 = vsel %vm1566_vm6, %v1818_v0, %v1563_v3 }
0x1692   :  { %v1572_v43 = vsel %vm1569_vm9, %v1571_v39, %v1567_v15 }
0x1693   :  { %v1578_v55 = vmul.f32 %v1576_v52, %v1572_v43 }
0x16f0   :  { %v1581_v41 = vpop.permute.xlu1 %1580 }
0x16f1   :  { %v1583_v45 = vmul.f32 %v1581_v41, %v1572_v43 }
0x16f3   :  { %1585 = vrot.lane.b32.xlu2 %v1583_v45, %s1826_s1 }
0x16f8   :  { %v1619_v50 = vpop.permute.xlu1 %1618 }
0x16f9   :  { %1728 = vmatmul.msk.f32.vlgmr.msra.gmra.mxu2 %vm490_vm7, %v1619_v50 }
0x174d   :  { %v1586_v58 = vpop.permute.xlu2 %1585 }
0x174e   :  { %v1588_v63 = vadd.f32 %v1586_v58, %v1578_v55 }
0x1750   :  { %1819 = vtanh.f32 %v1588_v63  ;;  %v1664_v21 = vrot.slane %v1588_v63, 4 }
0x1752   :  { %v1667_v23 = vsel %vm745_vm13, %v1666_v22, %v1664_v21 }
0x1753   :  { %1669 = vrot.lane.b32.xlu1 %v1667_v23, %s1827_s23 }
0x1756   :  { %v1820_v24 = vpop.eup %1819 }
0x1757   :  { %1591 = vrot.lane.b32.xlu0 %v1820_v24, %s1825_s27 }
0x177c   :  { %v1643_v27 = vpop.f32.mrf.mxu2 }
0x177d   :  { %v1644_v28 = vadd.f32 %v1740_v26, %v1643_v27 }
0x177f   :  { %1649 = vst [vmem:[%s2687_s3] sm:$0xff] %v1644_v28 }
0x17c5   :  { %v1670_v42 = vpop.permute.xlu1 %1669 }
0x17c6   :  { %1672 = vst.msk [vmem:[%s2688_s5] sm:$0x3f] %vm1659_vm10, %v1670_v42 }
0x17c9   :  { %v1592_v37 = vpop.permute.xlu0 %1591 }
0x17ca   :  { %v1594_v8 = vmul.f32 %v1592_v37, %v1572_v43 }
0x17cc   :  { %v1606_v13 = vrot.slane %v1594_v8, 2  ;;  %v1651_v16 = vrot.slane %v1594_v8, 4 }
0x17ce   :  { %v1654_v19 = vsel %vm745_vm13, %v1653_v9, %v1651_v16  ;;  %v1614_v62 = vsel %vm1610_vm3, %v2631_v4, %v1606_v13 }
0x17cf   :  { %1656 = vrot.lane.b32.xlu0 %v1654_v19, %s1826_s1  ;;  %1620 = vrot.lane.b32.xlu2 %v1614_v62, %s1826_s1 }
0x1829   :  { %v1621_v18 = vpop.permute.xlu2 %1620 }
0x182a   :  { %1729 = vmatmul.msk.f32.gmra.mxu2 %vm490_vm7, %v1621_v18 }
0x1841   :  { %v1657_v20 = vpop.permute.xlu0 %1656 }
0x1842   :  { %1660 = vst.msk [vmem:[%s2689_s4] sm:$0x3f] %vm1659_vm10, %v1657_v20 }
0x18ad   :  { %v1646_v31 = vpop.f32.mrf.mxu2 }
0x18ae   :  { %v1647_v40 = vadd.f32 %v1740_v26, %v1646_v31 }
0x18b0   :  { %1650 = vst [vmem:[%s2687_s3 + $0x8] sm:$0xff] %v1647_v40 }

</bundles_post_ra>
